<compile_context>
chip_gen: v6e
topology: v6e:2x2x1
jax: 0.10.0
libtpu: 0.0.40
codegen_flags: <defaults>
</compile_context>

<pallas_src>
import functools

import jax
import jax.numpy as jnp
from jax.experimental import pallas as pl
from jax.experimental.pallas import tpu as pltpu

LANE = 128


def _round_up(x, m):
    return ((x + m - 1) // m) * m


# -----------------------------------------------------------------------------
# Fused Pallas kernel:
#   (folded patch-embed + expand) matmul -> per-voxel LayerNorm -> 1x1x1 conv
# -----------------------------------------------------------------------------

def _fused_expand_ln_conv_kernel(x_ref, w_ref, b_ref, s_ref, bc_ref, wbd_ref,
                                 bo_ref, o_ref, *, eps):
    """x_ref  : (tm, Kin)          bf16  flattened input patches
       w_ref  : (Kin, ps3*E)       bf16  w_pe @ w_expand (folded)
       b_ref  : (1, ps3*E)         f32   b_pe @ w_expand (folded)
       s_ref  : (ps3*E, spad)      f32   block-averaging matrix (LN segment means)
       bc_ref : (spad, ps3*E)      f32   broadcast-back matrix
       wbd_ref: (ps3*E, ps3*npad)  bf16  block-diag(gamma * w_out), zero-padded
       bo_ref : (1, ps3*npad)      f32   tiled (beta @ w_out)
       o_ref  : (tm, ps3*npad)     bf16  per-voxel class logits (lane-dense slab)
    """
    y = jnp.dot(x_ref[...], w_ref[...], preferred_element_type=jnp.float32)
    y = y + b_ref[...]                                               # (tm, ps3*E) f32

    # LayerNorm statistics for all ps3 voxels at once: segment means on the MXU.
    mu = jnp.dot(y, s_ref[...], preferred_element_type=jnp.float32)       # (tm, spad)
    msq = jnp.dot(y * y, s_ref[...], preferred_element_type=jnp.float32)  # (tm, spad)
    var = jnp.maximum(msq - mu * mu, 0.0)
    inv = jax.lax.rsqrt(var + eps)

    # Broadcast per-voxel scalars back onto the (ps3*E)-wide row (also MXU).
    mu_bc = jnp.dot(mu, bc_ref[...], preferred_element_type=jnp.float32)
    inv_bc = jnp.dot(inv, bc_ref[...], preferred_element_type=jnp.float32)
    yn = (y - mu_bc) * inv_bc

    # gamma/beta already folded into block-diagonal conv weight / bias row.
    o = jnp.dot(yn.astype(wbd_ref.dtype), wbd_ref[...],
                preferred_element_type=jnp.float32)
    o_ref[...] = (o + bo_ref[...]).astype(o_ref.dtype)


def fused_expand_ln_conv(xp, w_fused, b_fused, s_mat, bc_mat, w_bd, bo,
                         *, out_lanes):
    M, kin = xp.shape
    n_exp = w_fused.shape[1]
    spad = s_mat.shape[1]

    # Row tile: multiple of 128 (MXU row granularity / bf16 sublane packing).
    # Size it so the grid has >= 8 steps (several pipeline stages per v7x core),
    # capped at 512 rows.  No HBM-side pad: Pallas masks the tail block and we
    # never mix rows, so garbage tail rows stay masked out.
    tm = min(512, max(LANE, _round_up(pl.cdiv(M, 8), LANE)))
    grid = pl.cdiv(M, tm)

    kernel = functools.partial(_fused_expand_ln_conv_kernel, eps=1e-5)
    return pl.pallas_call(
        kernel,
        out_shape=jax.ShapeDtypeStruct((M, out_lanes), jnp.bfloat16),
        grid=(grid,),
        in_specs=[
            pl.BlockSpec((tm, kin), lambda i: (i, 0)),
            pl.BlockSpec((kin, n_exp), lambda i: (0, 0)),
            pl.BlockSpec((1, n_exp), lambda i: (0, 0)),
            pl.BlockSpec((n_exp, spad), lambda i: (0, 0)),
            pl.BlockSpec((spad, n_exp), lambda i: (0, 0)),
            pl.BlockSpec((n_exp, out_lanes), lambda i: (0, 0)),
            pl.BlockSpec((1, out_lanes), lambda i: (0, 0)),
        ],
        out_specs=pl.BlockSpec((tm, out_lanes), lambda i: (i, 0)),
        compiler_params=pltpu.CompilerParams(
            dimension_semantics=("parallel",)),
    )(xp, w_fused, b_fused, s_mat, bc_mat, w_bd, bo)


# -----------------------------------------------------------------------------
# Params + forward (JAX glue around the fused kernel)
# -----------------------------------------------------------------------------

def init_params(key, in_chans, embed_dim, patch_size, num_classes):
    k1, k2, k3 = jax.random.split(key, 3)
    p3 = patch_size ** 3
    return {
        # PatchEmbed: Conv3d(in_chans, E, k=ps, s=ps); weight pre-flattened (C*ps^3, E)
        "w_pe": jax.random.normal(k1, (in_chans * p3, embed_dim), jnp.float32) * 0.02,
        "b_pe": jnp.zeros((1, embed_dim), jnp.float32),
        # FinalPatchExpand: Linear(E, ps^3*E, bias=False)
        "w_ex": jax.random.normal(k2, (embed_dim, p3 * embed_dim), jnp.float32) * 0.02,
        # FinalPatchExpand.norm = LayerNorm(E)
        "gamma": jnp.ones((1, embed_dim), jnp.float32),
        "beta": jnp.zeros((1, embed_dim), jnp.float32),
        # output: Conv3d(E, num_classes, kernel=1, bias=False) -> (E, num_classes)
        "w_out": jax.random.normal(k3, (embed_dim, num_classes), jnp.float32) * 0.02,
    }


@functools.partial(jax.jit, static_argnames=("patch_size", "num_classes"))
def hrtrans_forward(x, params, *, patch_size, num_classes):
    # x: NCDHW (PyTorch convention)
    B, C, D, H, W = x.shape
    ps = patch_size
    ps3 = ps ** 3
    nD, nH, nW = D // ps, H // ps, W // ps
    E = params["w_pe"].shape[1]

    # Lane-dense output packing: all ps3 voxels of a row share one 128-lane slab.
    npad = max(num_classes, -(-LANE // ps3))
    while (ps3 * npad) % LANE != 0:
        npad += 1
    out_lanes = ps3 * npad
    spad = _round_up(max(ps3, LANE), LANE)

    # PatchEmbed patch extraction: non-overlapping ps^3 patches -> rows (C,p1,p2,p3)-flat.
    xp = x.reshape(B, C, nD, ps, nH, ps, nW, ps)
    xp = xp.transpose(0, 2, 4, 6, 1, 3, 5, 7)
    xp = xp.reshape(B * nD * nH * nW, C * ps3).astype(jnp.bfloat16)

    # pos_drop: Dropout(p=0.0) -> identity (eval semantics)
    # TODO(synk): HRTransStages / FinalStage / UnetrBasicBlock (DS stem) are not defined
    # in the reference module; USING_DS_STEM=False assumed and the stages are treated as
    # an identity passthrough, which is what allows patch-embed to be folded
    # algebraically into the FinalPatchExpand linear below (revert once implemented).
    w_fused = jnp.dot(params["w_pe"], params["w_ex"]).astype(jnp.bfloat16)  # (C*ps3, ps3*E)
    b_fused = jnp.dot(params["b_pe"], params["w_ex"])                       # (1, ps3*E) f32

    # Segment-mean matrix (LN stats on MXU) and its broadcast-back counterpart.
    eye = jnp.eye(ps3, dtype=jnp.float32)
    seg = jnp.kron(eye, jnp.full((E, 1), 1.0 / E, jnp.float32))             # (ps3*E, ps3)
    s_mat = jnp.pad(seg, ((0, 0), (0, spad - ps3)))                         # (ps3*E, spad)
    bc_mat = jnp.pad(jnp.kron(eye, jnp.ones((1, E), jnp.float32)),
                     ((0, spad - ps3), (0, 0)))                             # (spad, ps3*E)

    # Fold LayerNorm gamma/beta into the 1x1x1 conv: block-diagonal weight + bias row.
    wg = params["gamma"].reshape(E, 1) * params["w_out"]                    # (E, nc)
    wg = jnp.pad(wg, ((0, 0), (0, npad - num_classes)))                     # (E, npad)
    w_bd = jnp.kron(eye, wg).astype(jnp.bfloat16)                           # (ps3*E, ps3*npad)
    bo = jnp.pad(jnp.dot(params["beta"], params["w_out"]),
                 ((0, 0), (0, npad - num_classes)))                         # (1, npad)
    bo_full = jnp.tile(bo, (1, ps3))                                        # (1, ps3*npad)

    # One fused kernel: expand matmul + per-voxel LayerNorm + 1x1x1 conv.
    out = fused_expand_ln_conv(xp, w_fused, b_fused, s_mat, bc_mat, w_bd,
                               bo_full, out_lanes=out_lanes)                # (M, ps3*npad) bf16

    # Pixel-shuffle + layout restore, now on num_classes-wide bf16 data only.
    # TODO(synk): assumes FinalPatchExpand rearranges '(p1 p2 p3 c)' with c fastest;
    # permute chunk order here if the reference rearrange string differs.
    out = out.reshape(B * nD * nH * nW, ps3, npad)[..., :num_classes]
    out = out.reshape(B, nD, nH, nW, ps, ps, ps, num_classes)
    out = out.transpose(0, 1, 4, 2, 5, 3, 6, 7)      # b (d p1) (h p2) (w p3) c
    out = out.reshape(B, D, H, W, num_classes)
    return out.transpose(0, 4, 1, 2, 3).astype(jnp.float32)   # back to NCDHW


# -----------------------------------------------------------------------------
# main
# -----------------------------------------------------------------------------

if __name__ == "__main__":
    B, C, D, H, W = 2, 4, 16, 16, 16
    patch_size = 2
    embed_dim = 32
    num_classes = 3

    key = jax.random.PRNGKey(0)
    kx, kp = jax.random.split(key)
    x = jax.random.normal(kx, (B, C, D, H, W), jnp.float32)
    params = init_params(kp, C, embed_dim, patch_size, num_classes)

    out = hrtrans_forward(x, params, patch_size=patch_size, num_classes=num_classes)
    out = jax.block_until_ready(out)

    assert out.shape == (B, num_classes, D, H, W), out.shape
    assert bool(jnp.all(jnp.isfinite(out)))
    print("KERNEL_OK")
</pallas_src>

<mosaic_0001>
module attributes {stable_mosaic.version = 11 : i64} {
  func.func @_fused_expand_ln_conv_kernel(%arg0: i32, %arg1: memref<128x32xbf16, #tpu.memory_space<vmem>>, %arg2: memref<32x256xbf16, #tpu.memory_space<vmem>>, %arg3: memref<1x256xf32, #tpu.memory_space<vmem>>, %arg4: memref<256x128xf32, #tpu.memory_space<vmem>>, %arg5: memref<128x256xf32, #tpu.memory_space<vmem>>, %arg6: memref<256x128xbf16, #tpu.memory_space<vmem>>, %arg7: memref<1x128xf32, #tpu.memory_space<vmem>>, %arg8: memref<128x128xbf16, #tpu.memory_space<vmem>>) attributes {dimension_semantics = [#tpu.dimension_semantics<parallel>], iteration_bounds = array<i64: 8>, scalar_prefetch = 0 : i64, scratch_operands = 0 : i64, tpu.core_type = #tpu.core_type<tc>, window_params = [{transform_indices = @transform_0, window_bounds = array<i64: 128, 32>}, {pipeline_mode = #tpu.pipeline_mode<synchronous>, transform_indices = @transform_1, window_bounds = array<i64: 32, 256>}, {pipeline_mode = #tpu.pipeline_mode<synchronous>, transform_indices = @transform_2, window_bounds = array<i64: 1, 256>}, {pipeline_mode = #tpu.pipeline_mode<synchronous>, transform_indices = @transform_3, window_bounds = array<i64: 256, 128>}, {pipeline_mode = #tpu.pipeline_mode<synchronous>, transform_indices = @transform_4, window_bounds = array<i64: 128, 256>}, {pipeline_mode = #tpu.pipeline_mode<synchronous>, transform_indices = @transform_5, window_bounds = array<i64: 256, 128>}, {pipeline_mode = #tpu.pipeline_mode<synchronous>, transform_indices = @transform_6, window_bounds = array<i64: 1, 128>}, {transform_indices = @transform_7, window_bounds = array<i64: 128, 128>}]} {
    %c0 = arith.constant 0 : index
    %c0_0 = arith.constant 0 : index
    %0 = vector.load %arg1[%c0, %c0_0] : memref<128x32xbf16, #tpu.memory_space<vmem>>, vector<128x32xbf16>
    %c0_1 = arith.constant 0 : index
    %c0_2 = arith.constant 0 : index
    %1 = vector.load %arg2[%c0_1, %c0_2] : memref<32x256xbf16, #tpu.memory_space<vmem>>, vector<32x256xbf16>
    %cst = arith.constant dense<0.000000e+00> : vector<128x256xf32>
    %2 = tpu.matmul %0, %1, %cst {dimension_numbers = #tpu.dot_dimension_numbers<[1], [0], [0], [1], [0, 0, 1, 1], [], []>} : vector<128x32xbf16>, vector<32x256xbf16>, vector<128x256xf32> -> vector<128x256xf32>
    %c0_3 = arith.constant 0 : index
    %c0_4 = arith.constant 0 : index
    %3 = vector.load %arg3[%c0_3, %c0_4] : memref<1x256xf32, #tpu.memory_space<vmem>>, vector<1x256xf32>
    %4 = vector.broadcast %3 : vector<1x256xf32> to vector<128x256xf32>
    %5 = arith.addf %2, %4 : vector<128x256xf32>
    %c0_5 = arith.constant 0 : index
    %c0_6 = arith.constant 0 : index
    %6 = vector.load %arg4[%c0_5, %c0_6] : memref<256x128xf32, #tpu.memory_space<vmem>>, vector<256x128xf32>
    %cst_7 = arith.constant dense<0.000000e+00> : vector<128x128xf32>
    %7 = tpu.matmul %5, %6, %cst_7 {dimension_numbers = #tpu.dot_dimension_numbers<[1], [0], [0], [1], [0, 0, 1, 1], [], []>} : vector<128x256xf32>, vector<256x128xf32>, vector<128x128xf32> -> vector<128x128xf32>
    %8 = arith.mulf %5, %5 : vector<128x256xf32>
    %c0_8 = arith.constant 0 : index
    %c0_9 = arith.constant 0 : index
    %9 = vector.load %arg4[%c0_8, %c0_9] : memref<256x128xf32, #tpu.memory_space<vmem>>, vector<256x128xf32>
    %cst_10 = arith.constant dense<0.000000e+00> : vector<128x128xf32>
    %10 = tpu.matmul %8, %9, %cst_10 {dimension_numbers = #tpu.dot_dimension_numbers<[1], [0], [0], [1], [0, 0, 1, 1], [], []>} : vector<128x256xf32>, vector<256x128xf32>, vector<128x128xf32> -> vector<128x128xf32>
    %11 = arith.mulf %7, %7 : vector<128x128xf32>
    %12 = arith.subf %10, %11 : vector<128x128xf32>
    %cst_11 = arith.constant 0.000000e+00 : f32
    %13 = vector.broadcast %cst_11 : f32 to vector<128x128xf32>
    %14 = arith.maximumf %12, %13 : vector<128x128xf32>
    %cst_12 = arith.constant 9.99999974E-6 : f32
    %15 = vector.broadcast %cst_12 : f32 to vector<128x128xf32>
    %16 = arith.addf %14, %15 : vector<128x128xf32>
    %17 = math.rsqrt %16 : vector<128x128xf32>
    %c0_13 = arith.constant 0 : index
    %c0_14 = arith.constant 0 : index
    %18 = vector.load %arg5[%c0_13, %c0_14] : memref<128x256xf32, #tpu.memory_space<vmem>>, vector<128x256xf32>
    %cst_15 = arith.constant dense<0.000000e+00> : vector<128x256xf32>
    %19 = tpu.matmul %7, %18, %cst_15 {dimension_numbers = #tpu.dot_dimension_numbers<[1], [0], [0], [1], [0, 0, 1, 1], [], []>} : vector<128x128xf32>, vector<128x256xf32>, vector<128x256xf32> -> vector<128x256xf32>
    %c0_16 = arith.constant 0 : index
    %c0_17 = arith.constant 0 : index
    %20 = vector.load %arg5[%c0_16, %c0_17] : memref<128x256xf32, #tpu.memory_space<vmem>>, vector<128x256xf32>
    %cst_18 = arith.constant dense<0.000000e+00> : vector<128x256xf32>
    %21 = tpu.matmul %17, %20, %cst_18 {dimension_numbers = #tpu.dot_dimension_numbers<[1], [0], [0], [1], [0, 0, 1, 1], [], []>} : vector<128x128xf32>, vector<128x256xf32>, vector<128x256xf32> -> vector<128x256xf32>
    %22 = arith.subf %5, %19 : vector<128x256xf32>
    %23 = arith.mulf %22, %21 : vector<128x256xf32>
    %24 = arith.truncf %23 : vector<128x256xf32> to vector<128x256xbf16>
    %c0_19 = arith.constant 0 : index
    %c0_20 = arith.constant 0 : index
    %25 = vector.load %arg6[%c0_19, %c0_20] : memref<256x128xbf16, #tpu.memory_space<vmem>>, vector<256x128xbf16>
    %cst_21 = arith.constant dense<0.000000e+00> : vector<128x128xf32>
    %26 = tpu.matmul %24, %25, %cst_21 {dimension_numbers = #tpu.dot_dimension_numbers<[1], [0], [0], [1], [0, 0, 1, 1], [], []>} : vector<128x256xbf16>, vector<256x128xbf16>, vector<128x128xf32> -> vector<128x128xf32>
    %c0_22 = arith.constant 0 : index
    %c0_23 = arith.constant 0 : index
    %27 = vector.load %arg7[%c0_22, %c0_23] : memref<1x128xf32, #tpu.memory_space<vmem>>, vector<1x128xf32>
    %28 = vector.broadcast %27 : vector<1x128xf32> to vector<128x128xf32>
    %29 = arith.addf %26, %28 : vector<128x128xf32>
    %30 = arith.truncf %29 : vector<128x128xf32> to vector<128x128xbf16>
    %c0_24 = arith.constant 0 : index
    %c0_25 = arith.constant 0 : index
    %31 = vector.load %arg8[%c0_24, %c0_25] : memref<128x128xbf16, #tpu.memory_space<vmem>>, vector<128x128xbf16>
    tpu.vector_store %arg8[%c0_24, %c0_25], %30 {strides = array<i32>} : memref<128x128xbf16, #tpu.memory_space<vmem>>, vector<128x128xbf16>,
    return
  }
  func.func @transform_0(%arg0: i32) -> (i32, i32) {
    %c0_i32 = arith.constant 0 : i32
    %c0_i32_0 = arith.constant 0 : i32
    return %arg0, %c0_i32 : i32, i32
  }
  func.func @transform_1(%arg0: i32) -> (i32, i32) {
    %c0_i32 = arith.constant 0 : i32
    %c0_i32_0 = arith.constant 0 : i32
    %c0_i32_1 = arith.constant 0 : i32
    return %c0_i32, %c0_i32_0 : i32, i32
  }
  func.func @transform_2(%arg0: i32) -> (i32, i32) {
    %c0_i32 = arith.constant 0 : i32
    %c0_i32_0 = arith.constant 0 : i32
    %c0_i32_1 = arith.constant 0 : i32
    return %c0_i32, %c0_i32_0 : i32, i32
  }
  func.func @transform_3(%arg0: i32) -> (i32, i32) {
    %c0_i32 = arith.constant 0 : i32
    %c0_i32_0 = arith.constant 0 : i32
    %c0_i32_1 = arith.constant 0 : i32
    return %c0_i32, %c0_i32_0 : i32, i32
  }
  func.func @transform_4(%arg0: i32) -> (i32, i32) {
    %c0_i32 = arith.constant 0 : i32
    %c0_i32_0 = arith.constant 0 : i32
    %c0_i32_1 = arith.constant 0 : i32
    return %c0_i32, %c0_i32_0 : i32, i32
  }
  func.func @transform_5(%arg0: i32) -> (i32, i32) {
    %c0_i32 = arith.constant 0 : i32
    %c0_i32_0 = arith.constant 0 : i32
    %c0_i32_1 = arith.constant 0 : i32
    return %c0_i32, %c0_i32_0 : i32, i32
  }
  func.func @transform_6(%arg0: i32) -> (i32, i32) {
    %c0_i32 = arith.constant 0 : i32
    %c0_i32_0 = arith.constant 0 : i32
    %c0_i32_1 = arith.constant 0 : i32
    return %c0_i32, %c0_i32_0 : i32, i32
  }
  func.func @transform_7(%arg0: i32) -> (i32, i32) {
    %c0_i32 = arith.constant 0 : i32
    %c0_i32_0 = arith.constant 0 : i32
    return %arg0, %c0_i32 : i32, i32
  }
}

</mosaic_0001>

<bundles_post_ra>
// kernel: hrtrans_forward.1
= control target key start
LH: loop header
LB: loop body
LE: loop exit
PB: predicated region body
PF: predicated region fallthrough
CT: control target
= control target key end

     0   :  { %s2238_s24 = smov 0   ;;  %s2872_s0 = inlined_call_operand.vmem [shape: bf16[1024,32], index: 0, kind: input, shape index: {}]   ;;  %s2873_s1 = inlined_call_operand.vmem [shape: bf16[32,256], index: 1, kind: input, shape index: {}]   ;;  %s2874_s2 = inlined_call_operand.vmem [shape: f32[1,256], index: 2, kind: input, shape index: {}]   ;;  %s2875_s3 = inlined_call_operand.vmem [shape: f32[256,128], index: 3, kind: input, shape index: {}]   ;;  %s2876_s4 = inlined_call_operand.vmem [shape: f32[128,256], index: 4, kind: input, shape index: {}]   ;;  %s2877_s5 = inlined_call_operand.vmem [shape: bf16[256,128], index: 5, kind: input, shape index: {}]   ;;  %s2878_s6 = inlined_call_operand.vmem [shape: f32[1,128], index: 6, kind: input, shape index: {}]   ;;  %s2879_s7 = inlined_call_operand.vmem [shape: bf16[1024,128], index: 7, kind: output, shape index: {}]  }
   0x1 LB: > { %s1749_s25 = sadd.s32 4294967295, %s2194_s24   ;;  %p1753_p0 = scmp.ge.s32.totalorder %s2194_s24, 1  ;;  %s2194_s24 = sphi %s2238_s24, %s17_s24  }
   0x2   : > { %p238_p1 = scmp.lt.s32.totalorder %s2194_s24, 9 }
   0x4   : > { %p239_p2 = pnand %p1753_p0, %p238_p1 }
   0x5   : > { %s1754_s28 = sshll.u32 (!%p239_p2), %s1749_s25, 4 }
   0x6   : > { %242 = sbr.rel (%p239_p2) target bundleno = 904 (0x388), region = 48  ;;  %p271_p3 = scmp.lt.s32.totalorder (!%p239_p2), %s1754_s28, 127 }
   0xb   : > { %v2126_v0 = vld [vmem:[%s2873_s1 + $0x14] ss:$8 sps:$4 sm:$0xff]   ;;  %v2128_v1 = vld [vmem:[%s2873_s1 + $0x10] ss:$8 sps:$4 sm:$0xff]   ;;  %v2196_v2 = vmov 0   ;;  %s2881_s28 = smov (!%p271_p3, %s1754_s28), 127  ;;  %v305_v46 = vlaneseq }
   0xc   : > { %432 = vmatprep.mubr.bf16.mxu0 %v2196_v2  ;;  %412 = vmatprep.subr.bf16.mxu0 %v2126_v0  ;;  %v2129_v3 = vld [vmem:[%s2873_s1 + $0x4] ss:$8 sps:$4 sm:$0xff]   ;;  %v2131_v4 = vld [vmem:[%s2873_s1] ss:$8 sps:$4 sm:$0xff]   ;;  %v544_v5 = vld [vmem:[%s2875_s3 + $0xf8] sm:$0xff]  ;;  %s1755_s22 = sshll.u32 %s2881_s28, 2 }
   0xd   : > { %413 = vmatpush1.bf16.msra.mxu0 %v2128_v1  ;;  %v528_v6 = vld [vmem:[%s2875_s3 + $0x78] sm:$0xff]  ;;  %v543_v7 = vld [vmem:[%s2875_s3 + $0xf0] sm:$0xff]  ;;  %1876 = vmatprep.subr.mxu1 %v544_v5  ;;  %v542_v9 = vld [vmem:[%s2875_s3 + $0xe8] sm:$0xff]  ;;  %s2285_s29 = scalar_lea.vmem %s2872_s0, %s1755_s22  ;;  %vm375_vm0 = vcmask 261120   ;;  %v306_v47 = vshrl.u32 %v305_v46, 7  ;;  %s2845_s23 = scalar_lea.vmem %s2879_s7, %s1755_s22 }
   0xe   : > { %v527_v8 = vld [vmem:[%s2875_s3 + $0x70] sm:$0xff]  ;;  %414 = vmatprep.subr.bf16.mxu0 %v2129_v3  ;;  %1877 = vmatpush3.msra.mxu1 %v528_v6  ;;  %v526_v10 = vld [vmem:[%s2875_s3 + $0x68] sm:$0xff]  ;;  %v541_v11 = vld [vmem:[%s2875_s3 + $0xe0] sm:$0xff] }
   0xf   : > { %1878 = vmatprep.subr.mxu1 %v543_v7  ;;  %v525_v12 = vld [vmem:[%s2875_s3 + $0x60] sm:$0xff]  ;;  %v540_v14 = vld [vmem:[%s2875_s3 + $0xd8] sm:$0xff]  ;;  %v539_v16 = vld [vmem:[%s2875_s3 + $0xd0] sm:$0xff]  ;;  %v307_v48 = vsub.s32 0, %v306_v47  ;;  %v311_v50 = vsub.s32 1, %v306_v47 }
  0x10   : > { %1879 = vmatpush3.msra.mxu1 %v527_v8  ;;  %v2132_v13 = vld [vmem:[%s2285_s29] sm:$0xff]   ;;  %v524_v15 = vld [vmem:[%s2875_s3 + $0x58] sm:$0xff]  ;;  %v523_v17 = vld [vmem:[%s2875_s3 + $0x50] sm:$0xff] }
  0x11   : > { %415 = vmatpush1.bf16.msra.mxu0 %v2131_v4  ;;  %1880 = vmatprep.subr.mxu1 %v542_v9  ;;  %v538_v18 = vld [vmem:[%s2875_s3 + $0xc8] sm:$0xff]  ;;  %v537_v21 = vld [vmem:[%s2875_s3 + $0xc0] sm:$0xff]  ;;  %v536_v23 = vld [vmem:[%s2875_s3 + $0xb8] sm:$0xff] }
  0x12   : > { %1956 = vmatprep.subr.mxu0 %v544_v5  ;;  %1881 = vmatpush3.msra.mxu1 %v526_v10  ;;  %v2133_v19 = vld [vmem:[%s2285_s29 + $0x8] sm:$0xff]   ;;  %v521_v22 = vld [vmem:[%s2875_s3 + $0x40] sm:$0xff]  ;;  %v520_v24 = vld [vmem:[%s2875_s3 + $0x38] sm:$0xff] }
  0x13   : > { %1882 = vmatprep.subr.mxu1 %v541_v11  ;;  %v522_v20 = vld [vmem:[%s2875_s3 + $0x48] sm:$0xff]  ;;  %v2134_v25 = vld [vmem:[%s2285_s29 + $0x10] sm:$0xff]   ;;  %v533_v30 = vld [vmem:[%s2875_s3 + $0xa0] sm:$0xff] }
  0x14   : > { %1770 = vmatmul.mubr.msk.bf16.vlgmr.msra.gmra.mxu0 %vm375_vm0, %v2132_v13  ;;  %1883 = vmatpush3.msra.mxu1 %v525_v12  ;;  %v535_v26 = vld [vmem:[%s2875_s3 + $0xb0] sm:$0xff]  ;;  %v534_v28 = vld [vmem:[%s2875_s3 + $0xa8] sm:$0xff]  ;;  %v517_v31 = vld [vmem:[%s2875_s3 + $0x20] sm:$0xff] }
  0x15   : > { %442 = vmatprep.mubr.bf16.mxu0 %v2196_v2  ;;  %1957 = vmatpush3.msra.mxu0 %v528_v6  ;;  %v519_v27 = vld [vmem:[%s2875_s3 + $0x30] sm:$0xff]  ;;  %v518_v29 = vld [vmem:[%s2875_s3 + $0x28] sm:$0xff]  ;;  %v532_v32 = vld [vmem:[%s2875_s3 + $0x98] sm:$0xff] }
  0x16   : > { %1958 = vmatprep.subr.mxu0 %v543_v7  ;;  %1884 = vmatprep.subr.mxu1 %v540_v14  ;;  %v2135_v33 = vld [vmem:[%s2285_s29 + $0x18] sm:$0xff]   ;;  %v531_v35 = vld [vmem:[%s2875_s3 + $0x90] sm:$0xff]  ;;  %v530_v37 = vld [vmem:[%s2875_s3 + $0x88] sm:$0xff] }
  0x17   : > { %1959 = vmatpush3.msra.mxu0 %v527_v8  ;;  %1885 = vmatpush3.msra.mxu1 %v524_v15  ;;  %v516_v34 = vld [vmem:[%s2875_s3 + $0x18] sm:$0xff]  ;;  %v515_v36 = vld [vmem:[%s2875_s3 + $0x10] sm:$0xff]  ;;  %v2136_v38 = vld [vmem:[%s2285_s29 + $0x20] sm:$0xff]  }
  0x18   : > { %1960 = vmatprep.subr.mxu0 %v542_v9  ;;  %1886 = vmatprep.subr.mxu1 %v539_v16  ;;  %v2137_v39 = vld [vmem:[%s2285_s29 + $0x28] sm:$0xff]   ;;  %v2138_v40 = vld [vmem:[%s2285_s29 + $0x30] sm:$0xff]   ;;  %v2139_v41 = vld [vmem:[%s2285_s29 + $0x38] sm:$0xff]  }
  0x19   : > { %1961 = vmatpush3.msra.mxu0 %v526_v10  ;;  %1887 = vmatpush3.msra.mxu1 %v523_v17  ;;  %v514_v42 = vld [vmem:[%s2875_s3 + $0x8] sm:$0xff]  ;;  %v529_v43 = vld [vmem:[%s2875_s3 + $0x80] sm:$0xff]  ;;  %v978_v45 = vld [vmem:[%s2876_s4 + $0xf8] sm:$0xff] }
  0x1a   : > { %1962 = vmatprep.subr.mxu0 %v541_v11  ;;  %1888 = vmatprep.subr.mxu1 %v538_v18  ;;  %v513_v44 = vld [vmem:[%s2875_s3] sm:$0xff]  ;;  %v977_v58 = vld [vmem:[%s2876_s4 + $0xf0] sm:$0xff]  ;;  %v976_v60 = vld [vmem:[%s2876_s4 + $0xe8] sm:$0xff] }
  0x1b   : > { %1963 = vmatpush3.msra.mxu0 %v525_v12  ;;  %1889 = vmatpush3.msra.mxu1 %v522_v20  ;;  %v303_v49 = vld [vmem:[%s2874_s2] sm:$0x3]  ;;  %v974_v4 = vld [vmem:[%s2876_s4 + $0xd8] sm:$0xff]  ;;  %v973_v10 = vld [vmem:[%s2876_s4 + $0xd0] sm:$0xff] }
  0x1c   : > { %1771 = vmatmul.mubr.msk.bf16.gmra.mxu0 %vm375_vm0, %v2133_v19  ;;  %1964 = vmatprep.subr.mxu0 %v540_v14  ;;  %v2394_v51 = vrot.slane %v303_v49, %v307_v48  ;;  %v2396_v52 = vrot.slane %v303_v49, %v311_v50  ;;  %v972_v12 = vld [vmem:[%s2876_s4 + $0xc8] sm:$0xff]  ;;  %v963_v50 = vld [vmem:[%s2876_s4 + $0x80] sm:$0xff] }
  0x1d   : > { %452 = vmatprep.mubr.bf16.mxu0 %v2196_v2  ;;  %1965 = vmatpush3.msra.mxu0 %v524_v15 }
  0x1e   : > { %1966 = vmatprep.subr.mxu0 %v539_v16  ;;  %1890 = vmatprep.subr.mxu1 %v537_v21 }
  0x1f   : > { %1967 = vmatpush3.msra.mxu0 %v523_v17  ;;  %1891 = vmatpush3.msra.mxu1 %v521_v22 }
  0x20   : > { %1968 = vmatprep.subr.mxu0 %v538_v18  ;;  %1892 = vmatprep.subr.mxu1 %v536_v23  ;;  %v971_v18 = vld [vmem:[%s2876_s4 + $0xc0] sm:$0xff] }
  0x21   : > { %1969 = vmatpush3.msra.mxu0 %v522_v20  ;;  %1893 = vmatpush3.msra.mxu1 %v520_v24  ;;  %v970_v20 = vld [vmem:[%s2876_s4 + $0xb8] sm:$0xff] }
  0x22   : > { %1970 = vmatprep.subr.mxu0 %v537_v21  ;;  %1894 = vmatprep.subr.mxu1 %v535_v26 }
  0x23   : > { %1971 = vmatpush3.msra.mxu0 %v521_v22  ;;  %1895 = vmatpush3.msra.mxu1 %v519_v27 }
  0x24   : > { %1772 = vmatmul.mubr.msk.bf16.gmra.mxu0 %vm375_vm0, %v2134_v25  ;;  %1972 = vmatprep.subr.mxu0 %v536_v23 }
  0x25   : > { %462 = vmatprep.mubr.bf16.mxu0 %v2196_v2  ;;  %1973 = vmatpush3.msra.mxu0 %v520_v24 }
  0x26   : > { %1974 = vmatprep.subr.mxu0 %v535_v26  ;;  %1896 = vmatprep.subr.mxu1 %v534_v28  ;;  %v969_v26 = vld [vmem:[%s2876_s4 + $0xb0] sm:$0xff] }
  0x27   : > { %1975 = vmatpush3.msra.mxu0 %v519_v27  ;;  %1897 = vmatpush3.msra.mxu1 %v518_v29 }
  0x28   : > { %1976 = vmatprep.subr.mxu0 %v534_v28  ;;  %1898 = vmatprep.subr.mxu1 %v533_v30  ;;  %v968_v28 = vld [vmem:[%s2876_s4 + $0xa8] sm:$0xff] }
  0x29   : > { %1977 = vmatpush3.msra.mxu0 %v518_v29  ;;  %1899 = vmatpush3.msra.mxu1 %v517_v31 }
  0x2a   : > { %1978 = vmatprep.subr.mxu0 %v533_v30  ;;  %1900 = vmatprep.subr.mxu1 %v532_v32 }
  0x2b   : > { %1979 = vmatpush3.msra.mxu0 %v517_v31  ;;  %1901 = vmatpush3.msra.mxu1 %v516_v34 }
  0x2c   : > { %1773 = vmatmul.mubr.msk.bf16.gmra.mxu0 %vm375_vm0, %v2135_v33  ;;  %1980 = vmatprep.subr.mxu0 %v532_v32 }
  0x2d   : > { %472 = vmatprep.mubr.bf16.mxu0 %v2196_v2  ;;  %1981 = vmatpush3.msra.mxu0 %v516_v34  ;;  %v967_v34 = vld [vmem:[%s2876_s4 + $0xa0] sm:$0xff] }
  0x2e   : > { %1982 = vmatprep.subr.mxu0 %v531_v35  ;;  %1902 = vmatprep.subr.mxu1 %v531_v35 }
  0x2f   : > { %1983 = vmatpush3.msra.mxu0 %v515_v36  ;;  %1903 = vmatpush3.msra.mxu1 %v515_v36  ;;  %v966_v36 = vld [vmem:[%s2876_s4 + $0x98] sm:$0xff] }
  0x30   : > { %1984 = vmatprep.subr.mxu0 %v530_v37  ;;  %1904 = vmatprep.subr.mxu1 %v530_v37 }
  0x31   : > { %1985 = vmatpush3.msra.mxu0 %v514_v42  ;;  %1905 = vmatpush3.msra.mxu1 %v514_v42  ;;  %v965_v42 = vld [vmem:[%s2876_s4 + $0x90] sm:$0xff] }
  0x32   : > { %1986 = vmatprep.subr.mxu0 %v529_v43  ;;  %1906 = vmatprep.subr.mxu1 %v529_v43 }
  0x33   : > { %1987 = vmatpush3.msra.mxu0 %v513_v44  ;;  %1907 = vmatpush3.msra.mxu1 %v513_v44  ;;  %v964_v44 = vld [vmem:[%s2876_s4 + $0x88] sm:$0xff] }
  0x34   : > { %1774 = vmatmul.mubr.msk.bf16.gmra.mxu0 %vm375_vm0, %v2136_v38  ;;  %979 = vmatprep.subr.mxu1 %v978_v45 }
  0x35   : > { %482 = vmatprep.mubr.bf16.mxu0 %v2196_v2  ;;  %1140 = vmatprep.subr.mxu0 %v978_v45 }
  0x3c   : > { %1775 = vmatmul.mubr.msk.bf16.gmra.mxu0 %vm375_vm0, %v2137_v39 }
  0x3d   : > { %492 = vmatprep.mubr.bf16.mxu0 %v2196_v2 }
  0x44   : > { %1776 = vmatmul.mubr.msk.bf16.gmra.mxu0 %vm375_vm0, %v2138_v40 }
  0x45   : > { %502 = vmatprep.mubr.bf16.mxu0 %v2196_v2  ;;  %v975_v2 = vld [vmem:[%s2876_s4 + $0xe0] sm:$0xff] }
  0x4c   : > { %1777 = vmatmul.mubr.msk.bf16.gmra.mxu0 %vm375_vm0, %v2139_v41 }
  0xd4   : > { %v434_v53 = vpop.f32.mrf.mxu0 }
  0xd5   : > { %v2399_v54 = vadd.f32 %v434_v53, %v2394_v51 }
  0xd6   : > { %v436_v55 = vpop.f32.mrf.mxu0 }
  0xd7   : > { %v2402_v56 = vadd.f32 %v436_v55, %v2396_v52  ;;  %v690_v61 = vmul.f32 %v2399_v54, %v2399_v54  ;;  %v962_v55 = vld [vmem:[%s2876_s4 + $0x78] sm:$0xff] }
  0xd8   : > { %v438_v57 = vpop.f32.mrf.mxu0 }
  0xd9   : > { %609 = vmatprep.mubr.f32.mxu1 %v2402_v56  ;;  %v691_v59 = vmul.f32 %v2402_v56, %v2402_v56  ;;  %v2416_v62 = vadd.f32 %v438_v57, %v2394_v51 }
  0xda   : > { %v440_v63 = vpop.f32.mrf.mxu0  ;;  %610 = vmatmul.mubr.f32.vlgmr.msra.gmra.mxu1 %v2399_v54 }
  0xdb   : > { %v2420_v0 = vadd.f32 %v440_v63, %v2396_v52  ;;  %786 = vmatprep.mubr.f32.mxu0 %v691_v59  ;;  %980 = vmatpush1.msra.mxu1 %v977_v58  ;;  %v692_v7 = vmul.f32 %v2416_v62, %v2416_v62  ;;  %v960_v63 = vld [vmem:[%s2876_s4 + $0x68] sm:$0xff] }
  0xdc   : > { %v444_v1 = vpop.f32.mrf.mxu0  ;;  %787 = vmatmul.mubr.f32.vlgmr.msra.gmra.mxu0 %v690_v61  ;;  %981 = vmatprep.subr.mxu1 %v976_v60 }
  0xdd   : > { %614 = vmatprep.mubr.f32.mxu1 %v2420_v0  ;;  %v693_v3 = vmul.f32 %v2420_v0, %v2420_v0  ;;  %1141 = vmatpush1.msra.mxu0 %v977_v58  ;;  %v2432_v5 = vadd.f32 %v444_v1, %v2394_v51 }
  0xde   : > { %v446_v6 = vpop.f32.mrf.mxu0  ;;  %615 = vmatmul.mubr.f32.gmra.mxu1 %v2416_v62  ;;  %1142 = vmatprep.subr.mxu0 %v976_v60  ;;  %v961_v60 = vld [vmem:[%s2876_s4 + $0x70] sm:$0xff] }
  0xdf   : > { %v2438_v8 = vadd.f32 %v446_v6, %v2396_v52  ;;  %791 = vmatprep.mubr.f32.mxu0 %v693_v3  ;;  %982 = vmatpush1.msra.mxu1 %v975_v2  ;;  %v694_v15 = vmul.f32 %v2432_v5, %v2432_v5  ;;  %v959_v3 = vld [vmem:[%s2876_s4 + $0x60] sm:$0xff] }
  0xe0   : > { %v448_v9 = vpop.f32.mrf.mxu0  ;;  %792 = vmatmul.mubr.f32.gmra.mxu0 %v692_v7  ;;  %983 = vmatprep.subr.mxu1 %v974_v4 }
  0xe1   : > { %619 = vmatprep.mubr.f32.mxu1 %v2438_v8  ;;  %v695_v11 = vmul.f32 %v2438_v8, %v2438_v8  ;;  %1143 = vmatpush1.msra.mxu0 %v975_v2  ;;  %v2450_v13 = vadd.f32 %v448_v9, %v2394_v51  ;;  %v958_v9 = vld [vmem:[%s2876_s4 + $0x58] sm:$0xff] }
  0xe2   : > { %v450_v14 = vpop.f32.mrf.mxu0  ;;  %620 = vmatmul.mubr.f32.gmra.mxu1 %v2432_v5  ;;  %1144 = vmatprep.subr.mxu0 %v974_v4 }
  0xe3   : > { %v2456_v16 = vadd.f32 %v450_v14, %v2396_v52  ;;  %796 = vmatprep.mubr.f32.mxu0 %v695_v11  ;;  %984 = vmatpush1.msra.mxu1 %v973_v10  ;;  %v696_v23 = vmul.f32 %v2450_v13, %v2450_v13 }
  0xe4   : > { %v454_v17 = vpop.f32.mrf.mxu0  ;;  %797 = vmatmul.mubr.f32.gmra.mxu0 %v694_v15  ;;  %985 = vmatprep.subr.mxu1 %v972_v12  ;;  %v956_v15 = vld [vmem:[%s2876_s4 + $0x48] sm:$0xff] }
  0xe5   : > { %624 = vmatprep.mubr.f32.mxu1 %v2456_v16  ;;  %v697_v19 = vmul.f32 %v2456_v16, %v2456_v16  ;;  %1145 = vmatpush1.msra.mxu0 %v973_v10  ;;  %v2468_v21 = vadd.f32 %v454_v17, %v2394_v51 }
  0xe6   : > { %v456_v22 = vpop.f32.mrf.mxu0  ;;  %625 = vmatmul.mubr.f32.gmra.mxu1 %v2450_v13  ;;  %1146 = vmatprep.subr.mxu0 %v972_v12  ;;  %v957_v12 = vld [vmem:[%s2876_s4 + $0x50] sm:$0xff] }
  0xe7   : > { %v2474_v24 = vadd.f32 %v456_v22, %v2396_v52  ;;  %801 = vmatprep.mubr.f32.mxu0 %v697_v19  ;;  %986 = vmatpush1.msra.mxu1 %v971_v18  ;;  %v698_v31 = vmul.f32 %v2468_v21, %v2468_v21 }
  0xe8   : > { %v458_v25 = vpop.f32.mrf.mxu0  ;;  %802 = vmatmul.mubr.f32.gmra.mxu0 %v696_v23  ;;  %987 = vmatprep.subr.mxu1 %v970_v20  ;;  %v955_v23 = vld [vmem:[%s2876_s4 + $0x40] sm:$0xff] }
  0xe9   : > { %629 = vmatprep.mubr.f32.mxu1 %v2474_v24  ;;  %v699_v27 = vmul.f32 %v2474_v24, %v2474_v24  ;;  %1147 = vmatpush1.msra.mxu0 %v971_v18  ;;  %v2486_v29 = vadd.f32 %v458_v25, %v2394_v51 }
  0xea   : > { %v460_v30 = vpop.f32.mrf.mxu0  ;;  %630 = vmatmul.mubr.f32.gmra.mxu1 %v2468_v21  ;;  %1148 = vmatprep.subr.mxu0 %v970_v20 }
  0xeb   : > { %v2492_v32 = vadd.f32 %v460_v30, %v2396_v52  ;;  %806 = vmatprep.mubr.f32.mxu0 %v699_v27  ;;  %988 = vmatpush1.msra.mxu1 %v969_v26  ;;  %v700_v39 = vmul.f32 %v2486_v29, %v2486_v29 }
  0xec   : > { %v464_v33 = vpop.f32.mrf.mxu0  ;;  %807 = vmatmul.mubr.f32.gmra.mxu0 %v698_v31  ;;  %989 = vmatprep.subr.mxu1 %v968_v28  ;;  %v953_v31 = vld [vmem:[%s2876_s4 + $0x30] sm:$0xff] }
  0xed   : > { %634 = vmatprep.mubr.f32.mxu1 %v2492_v32  ;;  %v701_v35 = vmul.f32 %v2492_v32, %v2492_v32  ;;  %1149 = vmatpush1.msra.mxu0 %v969_v26  ;;  %v2504_v37 = vadd.f32 %v464_v33, %v2394_v51  ;;  %v954_v26 = vld [vmem:[%s2876_s4 + $0x38] sm:$0xff] }
  0xee   : > { %v466_v38 = vpop.f32.mrf.mxu0  ;;  %635 = vmatmul.mubr.f32.gmra.mxu1 %v2486_v29  ;;  %1150 = vmatprep.subr.mxu0 %v968_v28 }
  0xef   : > { %v2510_v40 = vadd.f32 %v466_v38, %v2396_v52  ;;  %811 = vmatprep.mubr.f32.mxu0 %v701_v35  ;;  %990 = vmatpush1.msra.mxu1 %v967_v34  ;;  %v702_v47 = vmul.f32 %v2504_v37, %v2504_v37 }
  0xf0   : > { %v468_v41 = vpop.f32.mrf.mxu0  ;;  %812 = vmatmul.mubr.f32.gmra.mxu0 %v700_v39  ;;  %991 = vmatprep.subr.mxu1 %v966_v36 }
  0xf1   : > { %639 = vmatprep.mubr.f32.mxu1 %v2510_v40  ;;  %v703_v43 = vmul.f32 %v2510_v40, %v2510_v40  ;;  %1151 = vmatpush1.msra.mxu0 %v967_v34  ;;  %v2522_v45 = vadd.f32 %v468_v41, %v2394_v51  ;;  %v952_v34 = vld [vmem:[%s2876_s4 + $0x28] sm:$0xff] }
  0xf2   : > { %v470_v46 = vpop.f32.mrf.mxu0  ;;  %640 = vmatmul.mubr.f32.gmra.mxu1 %v2504_v37  ;;  %1152 = vmatprep.subr.mxu0 %v966_v36 }
  0xf3   : > { %v2528_v48 = vadd.f32 %v470_v46, %v2396_v52  ;;  %816 = vmatprep.mubr.f32.mxu0 %v703_v43  ;;  %992 = vmatpush1.msra.mxu1 %v965_v42  ;;  %v704_v59 = vmul.f32 %v2522_v45, %v2522_v45 }
  0xf4   : > { %v474_v49 = vpop.f32.mrf.mxu0  ;;  %817 = vmatmul.mubr.f32.gmra.mxu0 %v702_v47  ;;  %993 = vmatprep.subr.mxu1 %v964_v44 }
  0xf5   : > { %644 = vmatprep.mubr.f32.mxu1 %v2528_v48  ;;  %v705_v53 = vmul.f32 %v2528_v48, %v2528_v48  ;;  %1153 = vmatpush1.msra.mxu0 %v965_v42  ;;  %v2540_v57 = vadd.f32 %v474_v49, %v2394_v51 }
  0xf6   : > { %v476_v58 = vpop.f32.mrf.mxu0  ;;  %645 = vmatmul.mubr.f32.gmra.mxu1 %v2522_v45  ;;  %1154 = vmatprep.subr.mxu0 %v964_v44 }
  0xf7   : > { %v2549_v61 = vadd.f32 %v476_v58, %v2396_v52  ;;  %821 = vmatprep.mubr.f32.mxu0 %v705_v53  ;;  %994 = vmatpush1.msra.mxu1 %v963_v50  ;;  %v706_v7 = vmul.f32 %v2540_v57, %v2540_v57 }
  0xf8   : > { %v478_v1 = vpop.f32.mrf.mxu0  ;;  %822 = vmatmul.mubr.f32.gmra.mxu0 %v704_v59  ;;  %995 = vmatprep.subr.mxu1 %v962_v55 }
  0xf9   : > { %649 = vmatprep.mubr.f32.mxu1 %v2549_v61  ;;  %v707_v2 = vmul.f32 %v2549_v61, %v2549_v61  ;;  %996 = vmatpush1.msra.mxu1 %v961_v60  ;;  %v2561_v4 = vadd.f32 %v478_v1, %v2394_v51 }
  0xfa   : > { %v480_v6 = vpop.f32.mrf.mxu0  ;;  %650 = vmatmul.mubr.f32.gmra.mxu1 %v2540_v57  ;;  %997 = vmatprep.subr.mxu1 %v960_v63 }
  0xfb   : > { %v2570_v10 = vadd.f32 %v480_v6, %v2396_v52  ;;  %826 = vmatprep.mubr.f32.mxu0 %v707_v2  ;;  %1155 = vmatpush1.msra.mxu0 %v963_v50  ;;  %v708_v19 = vmul.f32 %v2561_v4, %v2561_v4 }
  0xfc   : > { %v484_v11 = vpop.f32.mrf.mxu0  ;;  %827 = vmatmul.mubr.f32.gmra.mxu0 %v706_v7  ;;  %998 = vmatpush1.msra.mxu1 %v959_v3 }
  0xfd   : > { %654 = vmatprep.mubr.f32.mxu1 %v2570_v10  ;;  %v709_v14 = vmul.f32 %v2570_v10, %v2570_v10  ;;  %999 = vmatprep.subr.mxu1 %v958_v9  ;;  %v2582_v17 = vadd.f32 %v484_v11, %v2394_v51 }
  0xfe   : > { %v486_v18 = vpop.f32.mrf.mxu0  ;;  %655 = vmatmul.mubr.f32.gmra.mxu1 %v2561_v4  ;;  %1156 = vmatprep.subr.mxu0 %v962_v55 }
  0xff   : > { %v2588_v20 = vadd.f32 %v486_v18, %v2396_v52  ;;  %831 = vmatprep.mubr.f32.mxu0 %v709_v14  ;;  %1000 = vmatpush1.msra.mxu1 %v957_v12  ;;  %v710_v30 = vmul.f32 %v2582_v17, %v2582_v17  ;;  %v949_v14 = vld [vmem:[%s2876_s4 + $0x10] sm:$0xff]  ;;  %v947_v18 = vld [vmem:[%s2876_s4] sm:$0xff] }
 0x100   : > { %v488_v22 = vpop.f32.mrf.mxu0  ;;  %832 = vmatmul.mubr.f32.gmra.mxu0 %v708_v19  ;;  %1001 = vmatprep.subr.mxu1 %v956_v15  ;;  %v2197_v19 = vmov 0.0  }
 0x101   : > { %659 = vmatprep.mubr.f32.mxu1 %v2588_v20  ;;  %v711_v25 = vmul.f32 %v2588_v20, %v2588_v20  ;;  %1157 = vmatpush1.msra.mxu0 %v961_v60  ;;  %v2600_v27 = vadd.f32 %v488_v22, %v2394_v51  ;;  %v2140_v22 = vld [vmem:[%s2877_s5 + $0x78] sm:$0xff]  }
 0x102   : > { %v490_v28 = vpop.f32.mrf.mxu0  ;;  %660 = vmatmul.mubr.f32.gmra.mxu1 %v2582_v17  ;;  %1158 = vmatprep.subr.mxu0 %v960_v63 }
 0x103   : > { %v2609_v33 = vadd.f32 %v490_v28, %v2396_v52  ;;  %836 = vmatprep.mubr.f32.mxu0 %v711_v25  ;;  %1002 = vmatpush1.msra.mxu1 %v955_v23  ;;  %v712_v41 = vmul.f32 %v2600_v27, %v2600_v27 }
 0x104   : > { %v494_v35 = vpop.f32.mrf.mxu0  ;;  %837 = vmatmul.mubr.f32.gmra.mxu0 %v710_v30  ;;  %1003 = vmatprep.subr.mxu1 %v954_v26 }
 0x105   : > { %664 = vmatprep.mubr.f32.mxu1 %v2609_v33  ;;  %v713_v36 = vmul.f32 %v2609_v33, %v2609_v33  ;;  %1004 = vmatpush1.msra.mxu1 %v953_v31  ;;  %v2618_v38 = vadd.f32 %v494_v35, %v2394_v51 }
 0x106   : > { %v496_v39 = vpop.f32.mrf.mxu0  ;;  %665 = vmatmul.mubr.f32.gmra.mxu1 %v2600_v27  ;;  %1005 = vmatprep.subr.mxu1 %v952_v34 }
 0x107   : > { %v2624_v42 = vadd.f32 %v496_v39, %v2396_v52  ;;  %841 = vmatprep.mubr.f32.mxu0 %v713_v36  ;;  %1159 = vmatpush1.msra.mxu0 %v959_v3  ;;  %v714_v49 = vmul.f32 %v2618_v38, %v2618_v38  ;;  %v2696_v39 = vld [vmem:[%s2877_s5 + $0x70] sm:$0xff]  }
 0x108   : > { %v498_v43 = vpop.f32.mrf.mxu0  ;;  %842 = vmatmul.mubr.f32.gmra.mxu0 %v712_v41  ;;  %1160 = vmatprep.subr.mxu0 %v958_v9 }
 0x109   : > { %669 = vmatprep.mubr.f32.mxu1 %v2624_v42  ;;  %v715_v44 = vmul.f32 %v2624_v42, %v2624_v42  ;;  %1161 = vmatpush1.msra.mxu0 %v957_v12  ;;  %v2630_v46 = vadd.f32 %v498_v43, %v2394_v51  ;;  %v951_v12 = vld [vmem:[%s2876_s4 + $0x20] sm:$0xff] }
 0x10a   : > { %v500_v47 = vpop.f32.mrf.mxu0  ;;  %670 = vmatmul.mubr.f32.gmra.mxu1 %v2618_v38  ;;  %1162 = vmatprep.subr.mxu0 %v956_v15  ;;  %v948_v15 = vld [vmem:[%s2876_s4 + $0x8] sm:$0xff] }
 0x10b   : > { %v2636_v50 = vadd.f32 %v500_v47, %v2396_v52  ;;  %846 = vmatprep.mubr.f32.mxu0 %v715_v44  ;;  %1163 = vmatpush1.msra.mxu0 %v955_v23  ;;  %v716_v60 = vmul.f32 %v2630_v46, %v2630_v46 }
 0x10c   : > { %v504_v53 = vpop.f32.mrf.mxu0  ;;  %847 = vmatmul.mubr.f32.gmra.mxu0 %v714_v49  ;;  %1164 = vmatprep.subr.mxu0 %v954_v26 }
 0x10d   : > { %674 = vmatprep.mubr.f32.mxu1 %v2636_v50  ;;  %v717_v55 = vmul.f32 %v2636_v50, %v2636_v50  ;;  %1165 = vmatpush1.msra.mxu0 %v953_v31  ;;  %v2642_v58 = vadd.f32 %v504_v53, %v2394_v51 }
 0x10e   : > { %v506_v59 = vpop.f32.mrf.mxu0  ;;  %675 = vmatmul.mubr.f32.gmra.mxu1 %v2630_v46  ;;  %1166 = vmatprep.subr.mxu0 %v952_v34  ;;  %v2691_v34 = vld [vmem:[%s2877_s5 + $0x38] sm:$0xff]  }
 0x10f   : > { %v2648_v63 = vadd.f32 %v506_v59, %v2396_v52  ;;  %851 = vmatprep.mubr.f32.mxu0 %v717_v55  ;;  %v718_v7 = vmul.f32 %v2642_v58, %v2642_v58  ;;  %1006 = vmatpush1.msra.mxu1 %v951_v12  ;;  %v2704_v55 = vld [vmem:[%s2877_s5 + $0x30] sm:$0xff]  }
 0x110   : > { %v508_v1 = vpop.f32.mrf.mxu0  ;;  %852 = vmatmul.mubr.f32.gmra.mxu0 %v716_v60 }
 0x111   : > { %679 = vmatprep.mubr.f32.mxu1 %v2648_v63  ;;  %v719_v2 = vmul.f32 %v2648_v63, %v2648_v63  ;;  %v2654_v3 = vadd.f32 %v508_v1, %v2394_v51  ;;  %1167 = vmatpush1.msra.mxu0 %v951_v12 }
 0x112   : > { %v510_v6 = vpop.f32.mrf.mxu0  ;;  %680 = vmatmul.mubr.f32.gmra.mxu1 %v2642_v58 }
 0x113   : > { %v2660_v9 = vadd.f32 %v510_v6, %v2396_v52  ;;  %856 = vmatprep.mubr.f32.mxu0 %v719_v2  ;;  %v720_v51 = vmul.f32 %v2654_v3, %v2654_v3  ;;  %v950_v52 = vld [vmem:[%s2876_s4 + $0x18] sm:$0xff]  ;;  %v2709_v2 = vld [vmem:[%s2877_s5 + $0x68] sm:$0xff]  }
 0x114   : > { %857 = vmatmul.mubr.f32.gmra.mxu0 %v718_v7  ;;  %1007 = vmatprep.subr.mxu1 %v950_v52 }
 0x115   : > { %684 = vmatprep.mubr.f32.mxu1 %v2660_v9  ;;  %v721_v11 = vmul.f32 %v2660_v9, %v2660_v9  ;;  %1168 = vmatprep.subr.mxu0 %v950_v52 }
 0x116   : > { %685 = vmatmul.mubr.f32.gmra.mxu1 %v2654_v3  ;;  %1169 = vmatpush1.msra.mxu0 %v949_v14 }
 0x117   : > { %861 = vmatprep.mubr.f32.mxu0 %v721_v11  ;;  %1008 = vmatpush1.msra.mxu1 %v949_v14 }
 0x118   : > { %862 = vmatmul.mubr.f32.gmra.mxu0 %v720_v51  ;;  %1009 = vmatprep.subr.mxu1 %v948_v15 }
 0x119   : > { %1170 = vmatprep.subr.mxu0 %v948_v15  ;;  %1010 = vmatpush1.msra.mxu1 %v947_v18  ;;  %v2717_v15 = vld [vmem:[%s2877_s5 + $0x28] sm:$0xff]  }
 0x11a   : > { %1043 = vmatprep.mubr.f32.mxu1 %v2197_v19  ;;  %1171 = vmatpush1.msra.mxu0 %v947_v18 }
 0x11b   : > { %1204 = vmatprep.mubr.f32.mxu0 %v2197_v19  ;;  %2100 = vmatprep.subr.bf16.mxu1 %v2140_v22 }
 0x11c   : > { %2036 = vmatprep.subr.bf16.mxu0 %v2140_v22 }
 0x19a   : > { %v1908_v23 = vpop.f32.mrf.mxu1 }
 0x19c   : > { %v1909_v25 = vpop.f32.mrf.mxu1  ;;  %v1988_v26 = vpop.f32.mrf.mxu0 }
 0x19d   : > { %v1910_v28 = vadd.f32 %v1909_v25, %v1908_v23 }
 0x19e   : > { %v1911_v30 = vpop.f32.mrf.mxu1  ;;  %v1989_v31 = vpop.f32.mrf.mxu0 }
 0x19f   : > { %v867_v35 = vmul.f32 %v1910_v28, %v1910_v28  ;;  %v1990_v36 = vadd.f32 %v1989_v31, %v1988_v26  ;;  %1044 = vmatmul.mubr.f32.vlgmr.msra.gmra.mxu1 %v1910_v28 }
 0x1a0   : > { %v1912_v41 = vpop.f32.mrf.mxu1  ;;  %v1991_v43 = vpop.f32.mrf.mxu0  ;;  %1049 = vmatprep.mubr.f32.mxu1 %v2197_v19  ;;  %2108 = vmatpush3.bf16.msra.mxu1 %v2691_v34 }
 0x1a1   : > { %v883_v44 = vsub.f32 %v1990_v36, %v867_v35  ;;  %v1913_v47 = vadd.f32 %v1912_v41, %v1911_v30  ;;  %2101 = vmatprep.subr.bf16.mxu1 %v2696_v39 }
 0x1a2   : > { %v1914_v49 = vpop.f32.mrf.mxu1  ;;  %v1992_v53 = vpop.f32.mrf.mxu0 }
 0x1a3   : > { %v899_v59 = vmax.f32 %v883_v44, 0.0  ;;  %v868_v60 = vmul.f32 %v1913_v47, %v1913_v47  ;;  %v1993_v1 = vadd.f32 %v1992_v53, %v1991_v43  ;;  %1050 = vmatmul.mubr.f32.gmra.mxu1 %v1913_v47 }
 0x1a4   : > { %v1915_v6 = vpop.f32.mrf.mxu1  ;;  %v1994_v7 = vpop.f32.mrf.mxu0  ;;  %1055 = vmatprep.mubr.f32.mxu1 %v2197_v19  ;;  %2109 = vmatpush3.bf16.msra.mxu1 %v2704_v55 }
 0x1a5   : > { %v915_v11 = vadd.f32 1e-05, %v899_v59  ;;  %v884_v51 = vsub.f32 %v1993_v1, %v868_v60  ;;  %v1916_v12 = vadd.f32 %v1915_v6, %v1914_v49  ;;  %2102 = vmatprep.subr.bf16.mxu1 %v2709_v2 }
 0x1a6   : > { %v1917_v52 = vpop.f32.mrf.mxu1  ;;  %v1995_v14 = vpop.f32.mrf.mxu0 }
 0x1a7   : > { %2156 = vrsqrt.f32 %v915_v11  ;;  %v900_v18 = vmax.f32 %v884_v51, 0.0  ;;  %v869_v22 = vmul.f32 %v1916_v12, %v1916_v12  ;;  %v1996_v23 = vadd.f32 %v1995_v14, %v1994_v7  ;;  %1056 = vmatmul.mubr.f32.gmra.mxu1 %v1916_v12 }
 0x1a8   : > { %v1918_v25 = vpop.f32.mrf.mxu1  ;;  %v1997_v26 = vpop.f32.mrf.mxu0  ;;  %1061 = vmatprep.mubr.f32.mxu1 %v2197_v19  ;;  %2110 = vmatpush3.bf16.msra.mxu1 %v2717_v15 }
 0x1a9   : > { %v916_v28 = vadd.f32 1e-05, %v900_v18  ;;  %v885_v30 = vsub.f32 %v1996_v23, %v869_v22  ;;  %v1919_v31 = vadd.f32 %v1918_v25, %v1917_v52 }
 0x1aa   : > { %v1920_v35 = vpop.f32.mrf.mxu1  ;;  %v1998_v36 = vpop.f32.mrf.mxu0 }
 0x1ab   : > { %2158 = vrsqrt.f32 %v916_v28  ;;  %v901_v41 = vmax.f32 %v885_v30, 0.0  ;;  %v870_v43 = vmul.f32 %v1919_v31, %v1919_v31  ;;  %v1999_v44 = vadd.f32 %v1998_v36, %v1997_v26  ;;  %1062 = vmatmul.mubr.f32.gmra.mxu1 %v1919_v31 }
 0x1ac   : > { %v1921_v47 = vpop.f32.mrf.mxu1  ;;  %v2000_v49 = vpop.f32.mrf.mxu0  ;;  %1067 = vmatprep.mubr.f32.mxu1 %v2197_v19 }
 0x1ad   : > { %v917_v53 = vadd.f32 1e-05, %v901_v41  ;;  %v886_v59 = vsub.f32 %v1999_v44, %v870_v43  ;;  %v1922_v60 = vadd.f32 %v1921_v47, %v1920_v35 }
 0x1ae   : > { %v1923_v1 = vpop.f32.mrf.mxu1  ;;  %v2001_v6 = vpop.f32.mrf.mxu0 }
 0x1af   : > { %2160 = vrsqrt.f32 %v917_v53  ;;  %v902_v7 = vmax.f32 %v886_v59, 0.0  ;;  %v871_v11 = vmul.f32 %v1922_v60, %v1922_v60  ;;  %v2002_v51 = vadd.f32 %v2001_v6, %v2000_v49  ;;  %1068 = vmatmul.mubr.f32.gmra.mxu1 %v1922_v60 }
 0x1b0   : > { %v1924_v12 = vpop.f32.mrf.mxu1  ;;  %v2003_v52 = vpop.f32.mrf.mxu0  ;;  %1073 = vmatprep.mubr.f32.mxu1 %v2197_v19 }
 0x1b1   : > { %v918_v14 = vadd.f32 1e-05, %v902_v7  ;;  %v887_v18 = vsub.f32 %v2002_v51, %v871_v11  ;;  %v1925_v22 = vadd.f32 %v1924_v12, %v1923_v1 }
 0x1b2   : > { %v1926_v23 = vpop.f32.mrf.mxu1  ;;  %v2004_v25 = vpop.f32.mrf.mxu0 }
 0x1b3   : > { %2162 = vrsqrt.f32 %v918_v14  ;;  %v903_v26 = vmax.f32 %v887_v18, 0.0  ;;  %v872_v28 = vmul.f32 %v1925_v22, %v1925_v22  ;;  %v2005_v30 = vadd.f32 %v2004_v25, %v2003_v52  ;;  %1074 = vmatmul.mubr.f32.gmra.mxu1 %v1925_v22 }
 0x1b4   : > { %v2157_v31 = vpop.eup %2156  ;;  %v1927_v35 = vpop.f32.mrf.mxu1  ;;  %1079 = vmatprep.mubr.f32.mxu1 %v2197_v19 }
 0x1b5   : > { %v2006_v36 = vpop.f32.mrf.mxu0  ;;  %v919_v41 = vadd.f32 1e-05, %v903_v26  ;;  %v888_v43 = vsub.f32 %v2005_v30, %v872_v28  ;;  %v1928_v44 = vadd.f32 %v1927_v35, %v1926_v23  ;;  %1205 = vmatmul.mubr.f32.vlgmr.msra.gmra.mxu0 %v2157_v31 }
 0x1b6   : > { %v1929_v47 = vpop.f32.mrf.mxu1  ;;  %1210 = vmatprep.mubr.f32.mxu0 %v2197_v19  ;;  %2037 = vmatpush3.bf16.msra.mxu0 %v2691_v34 }
 0x1b7   : > { %v2007_v49 = vpop.f32.mrf.mxu0  ;;  %2164 = vrsqrt.f32 %v919_v41  ;;  %v904_v53 = vmax.f32 %v888_v43, 0.0  ;;  %v873_v59 = vmul.f32 %v1928_v44, %v1928_v44  ;;  %1080 = vmatmul.mubr.f32.gmra.mxu1 %v1928_v44  ;;  %2038 = vmatprep.subr.bf16.mxu0 %v2696_v39 }
 0x1b8   : > { %v2008_v60 = vadd.f32 %v2007_v49, %v2006_v36  ;;  %v2159_v1 = vpop.eup %2158  ;;  %v1930_v6 = vpop.f32.mrf.mxu1  ;;  %1085 = vmatprep.mubr.f32.mxu1 %v2197_v19 }
 0x1b9   : > { %v2009_v7 = vpop.f32.mrf.mxu0  ;;  %v920_v11 = vadd.f32 1e-05, %v904_v53  ;;  %v1931_v12 = vadd.f32 %v1930_v6, %v1929_v47  ;;  %1211 = vmatmul.mubr.f32.gmra.mxu0 %v2159_v1 }
 0x1ba   : > { %v889_v51 = vsub.f32 %v2008_v60, %v873_v59  ;;  %v1932_v52 = vpop.f32.mrf.mxu1  ;;  %1216 = vmatprep.mubr.f32.mxu0 %v2197_v19  ;;  %2039 = vmatpush3.bf16.msra.mxu0 %v2704_v55 }
 0x1bb   : > { %v2010_v14 = vpop.f32.mrf.mxu0  ;;  %2166 = vrsqrt.f32 %v920_v11  ;;  %v874_v18 = vmul.f32 %v1931_v12, %v1931_v12  ;;  %1086 = vmatmul.mubr.f32.gmra.mxu1 %v1931_v12  ;;  %2040 = vmatprep.subr.bf16.mxu0 %v2709_v2 }
 0x1bc   : > { %v905_v34 = vmax.f32 %v889_v51, 0.0  ;;  %v2011_v22 = vadd.f32 %v2010_v14, %v2009_v7  ;;  %v2161_v39 = vpop.eup %2160  ;;  %v1933_v23 = vpop.f32.mrf.mxu1  ;;  %1091 = vmatprep.mubr.f32.mxu1 %v2197_v19 }
 0x1bd   : > { %v2012_v25 = vpop.f32.mrf.mxu0  ;;  %v1934_v30 = vadd.f32 %v1933_v23, %v1932_v52  ;;  %1217 = vmatmul.mubr.f32.gmra.mxu0 %v2161_v39 }
 0x1be   : > { %v921_v26 = vadd.f32 1e-05, %v905_v34  ;;  %v890_v28 = vsub.f32 %v2011_v22, %v874_v18  ;;  %v1935_v31 = vpop.f32.mrf.mxu1  ;;  %1222 = vmatprep.mubr.f32.mxu0 %v2197_v19  ;;  %2041 = vmatpush3.bf16.msra.mxu0 %v2717_v15 }
 0x1bf   : > { %v2013_v35 = vpop.f32.mrf.mxu0  ;;  %v875_v36 = vmul.f32 %v1934_v30, %v1934_v30  ;;  %1092 = vmatmul.mubr.f32.gmra.mxu1 %v1934_v30 }
 0x1c0   : > { %2168 = vrsqrt.f32 %v921_v26  ;;  %v906_v55 = vmax.f32 %v890_v28, 0.0  ;;  %v2014_v41 = vadd.f32 %v2013_v35, %v2012_v25  ;;  %v2163_v2 = vpop.eup %2162  ;;  %v1936_v43 = vpop.f32.mrf.mxu1  ;;  %1097 = vmatprep.mubr.f32.mxu1 %v2197_v19 }
 0x1c1   : > { %v2015_v44 = vpop.f32.mrf.mxu0  ;;  %v1937_v53 = vadd.f32 %v1936_v43, %v1935_v31  ;;  %1223 = vmatmul.mubr.f32.gmra.mxu0 %v2163_v2 }
 0x1c2   : > { %v922_v47 = vadd.f32 1e-05, %v906_v55  ;;  %v891_v49 = vsub.f32 %v2014_v41, %v875_v36  ;;  %v1938_v59 = vpop.f32.mrf.mxu1  ;;  %1228 = vmatprep.mubr.f32.mxu0 %v2197_v19 }
 0x1c3   : > { %v2016_v60 = vpop.f32.mrf.mxu0  ;;  %v876_v1 = vmul.f32 %v1937_v53, %v1937_v53  ;;  %1098 = vmatmul.mubr.f32.gmra.mxu1 %v1937_v53 }
 0x1c4   : > { %2170 = vrsqrt.f32 %v922_v47  ;;  %v907_v15 = vmax.f32 %v891_v49, 0.0  ;;  %v2017_v6 = vadd.f32 %v2016_v60, %v2015_v44  ;;  %v2165_v7 = vpop.eup %2164  ;;  %v1939_v11 = vpop.f32.mrf.mxu1  ;;  %1103 = vmatprep.mubr.f32.mxu1 %v2197_v19 }
 0x1c5   : > { %v2018_v51 = vpop.f32.mrf.mxu0  ;;  %v1940_v14 = vadd.f32 %v1939_v11, %v1938_v59  ;;  %1229 = vmatmul.mubr.f32.gmra.mxu0 %v2165_v7 }
 0x1c6   : > { %v923_v12 = vadd.f32 1e-05, %v907_v15  ;;  %v892_v52 = vsub.f32 %v2017_v6, %v876_v1  ;;  %v1941_v34 = vpop.f32.mrf.mxu1  ;;  %1234 = vmatprep.mubr.f32.mxu0 %v2197_v19 }
 0x1c7   : > { %v2019_v18 = vpop.f32.mrf.mxu0  ;;  %v877_v39 = vmul.f32 %v1940_v14, %v1940_v14  ;;  %1104 = vmatmul.mubr.f32.gmra.mxu1 %v1940_v14 }
 0x1c8   : > { %2172 = vrsqrt.f32 %v923_v12  ;;  %v908_v22 = vmax.f32 %v892_v52, 0.0  ;;  %v2020_v23 = vadd.f32 %v2019_v18, %v2018_v51  ;;  %v2167_v25 = vpop.eup %2166  ;;  %v1942_v26 = vpop.f32.mrf.mxu1  ;;  %1109 = vmatprep.mubr.f32.mxu1 %v2197_v19 }
 0x1c9   : > { %v2021_v28 = vpop.f32.mrf.mxu0  ;;  %v1943_v35 = vadd.f32 %v1942_v26, %v1941_v34  ;;  %1235 = vmatmul.mubr.f32.gmra.mxu0 %v2167_v25 }
 0x1ca   : > { %v924_v30 = vadd.f32 1e-05, %v908_v22  ;;  %v893_v31 = vsub.f32 %v2020_v23, %v877_v39  ;;  %v1944_v55 = vpop.f32.mrf.mxu1  ;;  %1240 = vmatprep.mubr.f32.mxu0 %v2197_v19 }
 0x1cb   : > { %v2022_v36 = vpop.f32.mrf.mxu0  ;;  %v878_v2 = vmul.f32 %v1943_v35, %v1943_v35  ;;  %1110 = vmatmul.mubr.f32.gmra.mxu1 %v1943_v35 }
 0x1cc   : > { %2174 = vrsqrt.f32 %v924_v30  ;;  %v909_v41 = vmax.f32 %v893_v31, 0.0  ;;  %v2023_v43 = vadd.f32 %v2022_v36, %v2021_v28  ;;  %v1945_v47 = vpop.f32.mrf.mxu1  ;;  %1115 = vmatprep.mubr.f32.mxu1 %v2197_v19 }
 0x1cd   : > { %v2169_v44 = vpop.eup %2168  ;;  %v2024_v49 = vpop.f32.mrf.mxu0  ;;  %v1946_v60 = vadd.f32 %v1945_v47, %v1944_v55 }
 0x1ce   : > { %v925_v53 = vadd.f32 1e-05, %v909_v41  ;;  %v894_v59 = vsub.f32 %v2023_v43, %v878_v2  ;;  %1241 = vmatmul.mubr.f32.gmra.mxu0 %v2169_v44  ;;  %v1947_v15 = vpop.f32.mrf.mxu1 }
 0x1cf   : > { %v2025_v1 = vpop.f32.mrf.mxu0  ;;  %1246 = vmatprep.mubr.f32.mxu0 %v2197_v19  ;;  %v879_v7 = vmul.f32 %v1946_v60, %v1946_v60  ;;  %1116 = vmatmul.mubr.f32.gmra.mxu1 %v1946_v60 }
 0x1d0   : > { %2176 = vrsqrt.f32 %v925_v53  ;;  %v910_v6 = vmax.f32 %v894_v59, 0.0  ;;  %v2026_v11 = vadd.f32 %v2025_v1, %v2024_v49  ;;  %v1948_v12 = vpop.f32.mrf.mxu1  ;;  %1121 = vmatprep.mubr.f32.mxu1 %v2197_v19 }
 0x1d1   : > { %v2171_v51 = vpop.eup %2170  ;;  %v2027_v52 = vpop.f32.mrf.mxu0  ;;  %v1949_v18 = vadd.f32 %v1948_v12, %v1947_v15 }
 0x1d2   : > { %v926_v14 = vadd.f32 1e-05, %v910_v6  ;;  %v895_v34 = vsub.f32 %v2026_v11, %v879_v7  ;;  %1247 = vmatmul.mubr.f32.gmra.mxu0 %v2171_v51  ;;  %v1950_v22 = vpop.f32.mrf.mxu1 }
 0x1d3   : > { %v2028_v39 = vpop.f32.mrf.mxu0  ;;  %1252 = vmatprep.mubr.f32.mxu0 %v2197_v19  ;;  %v880_v25 = vmul.f32 %v1949_v18, %v1949_v18  ;;  %1122 = vmatmul.mubr.f32.gmra.mxu1 %v1949_v18 }
 0x1d4   : > { %2178 = vrsqrt.f32 %v926_v14  ;;  %v911_v23 = vmax.f32 %v895_v34, 0.0  ;;  %v2029_v26 = vadd.f32 %v2028_v39, %v2027_v52  ;;  %v1951_v30 = vpop.f32.mrf.mxu1  ;;  %1127 = vmatprep.mubr.f32.mxu1 %v2197_v19 }
 0x1d5   : > { %v2173_v28 = vpop.eup %2172  ;;  %v2030_v31 = vpop.f32.mrf.mxu0  ;;  %v1952_v36 = vadd.f32 %v1951_v30, %v1950_v22  ;;  %v2146_v22 = vld [vmem:[%s2877_s5 + $0x60] sm:$0xff]   ;;  %v2149_v30 = vld [vmem:[%s2877_s5 + $0x18] sm:$0xff]  }
 0x1d6   : > { %v927_v35 = vadd.f32 1e-05, %v911_v23  ;;  %v896_v55 = vsub.f32 %v2029_v26, %v880_v25  ;;  %1253 = vmatmul.mubr.f32.gmra.mxu0 %v2173_v28  ;;  %v1953_v41 = vpop.f32.mrf.mxu1  ;;  %2103 = vmatprep.subr.bf16.mxu1 %v2146_v22  ;;  %v2147_v23 = vld [vmem:[%s2877_s5 + $0x20] sm:$0xff]   ;;  %v2148_v28 = vld [vmem:[%s2877_s5 + $0x58] sm:$0xff]  }
 0x1d7   : > { %v2031_v2 = vpop.f32.mrf.mxu0  ;;  %1258 = vmatprep.mubr.f32.mxu0 %v2197_v19  ;;  %v881_v44 = vmul.f32 %v1952_v36, %v1952_v36  ;;  %1128 = vmatmul.mubr.f32.gmra.mxu1 %v1952_v36  ;;  %v2151_v36 = vld [vmem:[%s2877_s5 + $0x10] sm:$0xff]  }
 0x1d8   : > { %2180 = vrsqrt.f32 %v927_v35  ;;  %v912_v43 = vmax.f32 %v896_v55, 0.0  ;;  %v2032_v47 = vadd.f32 %v2031_v2, %v2030_v31  ;;  %v1954_v53 = vpop.f32.mrf.mxu1  ;;  %1133 = vmatprep.mubr.f32.mxu1 %v2197_v19  ;;  %2042 = vmatprep.subr.bf16.mxu0 %v2146_v22  ;;  %v2150_v55 = vld [vmem:[%s2877_s5 + $0x50] sm:$0xff]   ;;  %v2154_v2 = vld [vmem:[%s2877_s5 + $0x40] sm:$0xff]  }
 0x1d9   : > { %v2175_v49 = vpop.eup %2174  ;;  %v2033_v59 = vpop.f32.mrf.mxu0  ;;  %v1955_v1 = vadd.f32 %v1954_v53, %v1953_v41  ;;  %2111 = vmatpush3.bf16.msra.mxu1 %v2147_v23  ;;  %2043 = vmatpush3.bf16.msra.mxu0 %v2147_v23  ;;  %v2152_v41 = vld [vmem:[%s2877_s5 + $0x48] sm:$0xff]  }
 0x1da   : > { %v928_v60 = vadd.f32 1e-05, %v912_v43  ;;  %v897_v15 = vsub.f32 %v2032_v47, %v881_v44  ;;  %1259 = vmatmul.mubr.f32.gmra.mxu0 %v2175_v49  ;;  %2104 = vmatprep.subr.bf16.mxu1 %v2148_v28  ;;  %v2155_v43 = vld [vmem:[%s2877_s5] sm:$0xff]  }
 0x1db   : > { %v2034_v6 = vpop.f32.mrf.mxu0  ;;  %1264 = vmatprep.mubr.f32.mxu0 %v2197_v19  ;;  %v882_v11 = vmul.f32 %v1955_v1, %v1955_v1  ;;  %1134 = vmatmul.mubr.f32.gmra.mxu1 %v1955_v1 }
 0x1dc   : > { %2182 = vrsqrt.f32 %v928_v60  ;;  %v913_v7 = vmax.f32 %v897_v15, 0.0  ;;  %v2035_v51 = vadd.f32 %v2034_v6, %v2033_v59  ;;  %2044 = vmatprep.subr.bf16.mxu0 %v2148_v28 }
 0x1dd   : > { %v2177_v12 = vpop.eup %2176  ;;  %2112 = vmatpush3.bf16.msra.mxu1 %v2149_v30  ;;  %2045 = vmatpush3.bf16.msra.mxu0 %v2149_v30 }
 0x1de   : > { %v929_v52 = vadd.f32 1e-05, %v913_v7  ;;  %v898_v14 = vsub.f32 %v2035_v51, %v882_v11  ;;  %1265 = vmatmul.mubr.f32.gmra.mxu0 %v2177_v12  ;;  %2105 = vmatprep.subr.bf16.mxu1 %v2150_v55 }
 0x1df   : > { %1270 = vmatprep.mubr.f32.mxu0 %v2197_v19  ;;  %2046 = vmatprep.subr.bf16.mxu0 %v2150_v55 }
 0x1e0   : > { %2184 = vrsqrt.f32 %v929_v52  ;;  %v914_v34 = vmax.f32 %v898_v14, 0.0 }
 0x1e1   : > { %v2179_v18 = vpop.eup %2178  ;;  %2113 = vmatpush3.bf16.msra.mxu1 %v2151_v36  ;;  %2047 = vmatpush3.bf16.msra.mxu0 %v2151_v36 }
 0x1e2   : > { %v930_v39 = vadd.f32 1e-05, %v914_v34  ;;  %1271 = vmatmul.mubr.f32.gmra.mxu0 %v2179_v18  ;;  %2106 = vmatprep.subr.bf16.mxu1 %v2152_v41 }
 0x1e3   : > { %1276 = vmatprep.mubr.f32.mxu0 %v2197_v19  ;;  %2048 = vmatprep.subr.bf16.mxu0 %v2152_v41 }
 0x1e4   : > { %2186 = vrsqrt.f32 %v930_v39 }
 0x1e5   : > { %v2181_v25 = vpop.eup %2180 }
 0x1e6   : > { %1277 = vmatmul.mubr.f32.gmra.mxu0 %v2181_v25 }
 0x1e7   : > { %1282 = vmatprep.mubr.f32.mxu0 %v2197_v19 }
 0x1e9   : > { %v2183_v26 = vpop.eup %2182 }
 0x1ea   : > { %1283 = vmatmul.mubr.f32.gmra.mxu0 %v2183_v26 }
 0x1eb   : > { %1288 = vmatprep.mubr.f32.mxu0 %v2197_v19 }
 0x1ed   : > { %v2185_v31 = vpop.eup %2184 }
 0x1ee   : > { %1289 = vmatmul.mubr.f32.gmra.mxu0 %v2185_v31 }
 0x1ef   : > { %1294 = vmatprep.mubr.f32.mxu0 %v2197_v19  ;;  %v2153_v19 = vld [vmem:[%s2877_s5 + $0x8] sm:$0xff]  }
 0x1f0   : > { %2114 = vmatpush3.bf16.msra.mxu1 %v2153_v19  ;;  %2049 = vmatpush3.bf16.msra.mxu0 %v2153_v19 }
 0x1f1   : > { %v2187_v35 = vpop.eup %2186  ;;  %2050 = vmatprep.subr.bf16.mxu0 %v2154_v2  ;;  %2107 = vmatprep.subr.bf16.mxu1 %v2154_v2 }
 0x1f2   : > { %1295 = vmatmul.mubr.f32.gmra.mxu0 %v2187_v35 }
 0x1f4   : > { %2051 = vmatpush3.bf16.msra.mxu0 %v2155_v43  ;;  %2115 = vmatpush3.bf16.msra.mxu1 %v2155_v43 }
 0x25f   : > { %v1045_v44 = vpop.f32.mrf.mxu1 }
 0x260   : > { %v1301_v25 = vsub.f32 %v2399_v54, %v1045_v44 }
 0x261   : > { %v1047_v47 = vpop.f32.mrf.mxu1 }
 0x262   : > { %v1302_v39 = vsub.f32 %v2402_v56, %v1047_v47 }
 0x263   : > { %v1051_v49 = vpop.f32.mrf.mxu1 }
 0x264   : > { %v1303_v34 = vsub.f32 %v2416_v62, %v1051_v49 }
 0x265   : > { %v1053_v53 = vpop.f32.mrf.mxu1 }
 0x266   : > { %v1304_v23 = vsub.f32 %v2420_v0, %v1053_v53 }
 0x267   : > { %v1057_v59 = vpop.f32.mrf.mxu1 }
 0x268   : > { %v1305_v49 = vsub.f32 %v2432_v5, %v1057_v59 }
 0x269   : > { %v1059_v60 = vpop.f32.mrf.mxu1 }
 0x26a   : > { %v1306_v54 = vsub.f32 %v2438_v8, %v1059_v60 }
 0x26b   : > { %v1063_v15 = vpop.f32.mrf.mxu1 }
 0x26c   : > { %v1307_v56 = vsub.f32 %v2450_v13, %v1063_v15 }
 0x26d   : > { %v1065_v1 = vpop.f32.mrf.mxu1 }
 0x26e   : > { %v1308_v44 = vsub.f32 %v2456_v16, %v1065_v1 }
 0x26f   : > { %v1069_v6 = vpop.f32.mrf.mxu1 }
 0x270   : > { %v1309_v1 = vsub.f32 %v2468_v21, %v1069_v6 }
 0x271   : > { %v1071_v7 = vpop.f32.mrf.mxu1 }
 0x272   : > { %v1310_v5 = vsub.f32 %v2474_v24, %v1071_v7 }
 0x273   : > { %v1075_v11 = vpop.f32.mrf.mxu1 }
 0x274   : > { %v1311_v8 = vsub.f32 %v2486_v29, %v1075_v11 }
 0x275   : > { %v1077_v51 = vpop.f32.mrf.mxu1  ;;  %v1206_v12 = vpop.f32.mrf.mxu0 }
 0x276   : > { %v1333_v55 = vmul.f32 %v1301_v25, %v1206_v12  ;;  %v1312_v59 = vsub.f32 %v2492_v32, %v1077_v51 }
 0x277   : > { %v2783_v52 = vpop.f32.mrf.mxu1  ;;  %v1208_v14 = vpop.f32.mrf.mxu0 }
 0x278   : > { %v1334_v31 = vmul.f32 %v1302_v39, %v1208_v14  ;;  %v1313_v32 = vsub.f32 %v2504_v37, %v2783_v52 }
 0x279   : > { %v2786_v18 = vpop.f32.mrf.mxu1  ;;  %v1212_v22 = vpop.f32.mrf.mxu0 }
 0x27a   : > { %v1335_v26 = vmul.f32 %v1303_v34, %v1212_v22  ;;  %v1314_v24 = vsub.f32 %v2510_v40, %v2786_v18 }
 0x27b   : > { %v1087_v28 = vpop.f32.mrf.mxu1  ;;  %v1214_v30 = vpop.f32.mrf.mxu0 }
 0x27c   : > { %v1336_v35 = vmul.f32 %v1304_v23, %v1214_v30  ;;  %v1365_v2 = vpack.c.bf16 %v1335_v26, %v1333_v55 }
 0x27d   : > { %v1089_v36 = vpop.f32.mrf.mxu1  ;;  %v1218_v41 = vpop.f32.mrf.mxu0 }
 0x27e   : > { %v1366_v19 = vpack.c.bf16 %v1336_v35, %v1334_v31  ;;  %v1337_v39 = vmul.f32 %v1305_v49, %v1218_v41  ;;  %v1316_v21 = vsub.f32 %v2528_v48, %v1089_v36 }
 0x27f   : > { %v2791_v62 = vpop.f32.mrf.mxu1  ;;  %v1220_v43 = vpop.f32.mrf.mxu0 }
 0x280   : > { %1548 = vmatprep.mubr.bf16.mxu0 %v1366_v19  ;;  %v1338_v34 = vmul.f32 %v1306_v54, %v1220_v43  ;;  %v1315_v54 = vsub.f32 %v2522_v45, %v1087_v28  ;;  %v1317_v52 = vsub.f32 %v2540_v57, %v2791_v62 }
 0x281   : > { %v2794_v47 = vpop.f32.mrf.mxu1  ;;  %v1224_v0 = vpop.f32.mrf.mxu0  ;;  %1549 = vmatmul.mubr.bf16.vlgmr.msra.gmra.mxu0 %v1365_v2 }
 0x282   : > { %v1339_v53 = vmul.f32 %v1307_v56, %v1224_v0  ;;  %v1318_v48 = vsub.f32 %v2549_v61, %v2794_v47 }
 0x283   : > { %v1099_v12 = vpop.f32.mrf.mxu1  ;;  %v1226_v14 = vpop.f32.mrf.mxu0 }
 0x284   : > { %v1340_v22 = vmul.f32 %v1308_v44, %v1226_v14  ;;  %v1367_v13 = vpack.c.bf16 %v1339_v53, %v1337_v39 }
 0x285   : > { %v1101_v23 = vpop.f32.mrf.mxu1  ;;  %v1230_v25 = vpop.f32.mrf.mxu0 }
 0x286   : > { %v1368_v26 = vpack.c.bf16 %v1340_v22, %v1338_v34  ;;  %v1341_v2 = vmul.f32 %v1309_v1, %v1230_v25  ;;  %v1319_v25 = vsub.f32 %v2561_v4, %v1099_v12  ;;  %v1320_v37 = vsub.f32 %v2570_v10, %v1101_v23 }
 0x287   : > { %v2799_v15 = vpop.f32.mrf.mxu1  ;;  %v1232_v30 = vpop.f32.mrf.mxu0 }
 0x288   : > { %1556 = vmatprep.mubr.bf16.mxu1 %v1368_v26  ;;  %v1342_v41 = vmul.f32 %v1310_v5, %v1232_v30  ;;  %v1321_v62 = vsub.f32 %v2582_v17, %v2799_v15 }
 0x289   : > { %v2802_v60 = vpop.f32.mrf.mxu1  ;;  %v1236_v16 = vpop.f32.mrf.mxu0  ;;  %1557 = vmatmul.mubr.bf16.vlgmr.msra.gmra.mxu1 %v1367_v13 }
 0x28a   : > { %v1343_v31 = vmul.f32 %v1311_v8, %v1236_v16  ;;  %v1322_v10 = vsub.f32 %v2588_v20, %v2802_v60 }
 0x28b   : > { %v1111_v35 = vpop.f32.mrf.mxu1  ;;  %v1238_v55 = vpop.f32.mrf.mxu0 }
 0x28c   : > { %v1344_v19 = vmul.f32 %v1312_v59, %v1238_v55  ;;  %v1369_v0 = vpack.c.bf16 %v1343_v31, %v1341_v2  ;;  %v1323_v1 = vsub.f32 %v2600_v27, %v1111_v35 }
 0x28d   : > { %v1113_v29 = vpop.f32.mrf.mxu1 }
 0x28e   : > { %v1242_v43 = vpop.f32.mrf.mxu0  ;;  %v1370_v56 = vpack.c.bf16 %v1344_v19, %v1342_v41  ;;  %v1324_v57 = vsub.f32 %v2609_v33, %v1113_v29 }
 0x28f   : > { %v1117_v6 = vpop.f32.mrf.mxu1  ;;  %v1345_v14 = vmul.f32 %v1313_v32, %v1242_v43 }
 0x290   : > { %v1244_v11 = vpop.f32.mrf.mxu0  ;;  %1564 = vmatprep.mubr.bf16.mxu1 %v1370_v56  ;;  %v1325_v15 = vsub.f32 %v2618_v38, %v1117_v6 }
 0x291   : > { %1565 = vmatmul.mubr.bf16.gmra.mxu1 %v1369_v0  ;;  %v1346_v49 = vmul.f32 %v1314_v24, %v1244_v11  ;;  %v1119_v39 = vpop.f32.mrf.mxu1 }
 0x292   : > { %v1248_v44 = vpop.f32.mrf.mxu0  ;;  %v1326_v33 = vsub.f32 %v2624_v42, %v1119_v39 }
 0x293   : > { %v1347_v7 = vmul.f32 %v1315_v54, %v1248_v44  ;;  %v1123_v18 = vpop.f32.mrf.mxu1 }
 0x294   : > { %v1250_v51 = vpop.f32.mrf.mxu0  ;;  %v1327_v0 = vsub.f32 %v2630_v46, %v1123_v18 }
 0x295   : > { %v1348_v53 = vmul.f32 %v1316_v21, %v1250_v51  ;;  %v1371_v45 = vpack.c.bf16 %v1347_v7, %v1345_v14  ;;  %v1125_v59 = vpop.f32.mrf.mxu1 }
 0x296   : > { %v1254_v34 = vpop.f32.mrf.mxu0  ;;  %v1328_v17 = vsub.f32 %v2636_v50, %v1125_v59 }
 0x297   : > { %v1372_v22 = vpack.c.bf16 %v1348_v53, %v1346_v49  ;;  %v1349_v8 = vmul.f32 %v1317_v52, %v1254_v34  ;;  %v1129_v47 = vpop.f32.mrf.mxu1 }
 0x298   : > { %v1256_v28 = vpop.f32.mrf.mxu0  ;;  %v1329_v50 = vsub.f32 %v2642_v58, %v1129_v47 }
 0x299   : > { %1572 = vmatprep.mubr.bf16.mxu1 %v1372_v22  ;;  %v1350_v13 = vmul.f32 %v1318_v48, %v1256_v28  ;;  %v1131_v56 = vpop.f32.mrf.mxu1 }
 0x29a   : > { %v1260_v40 = vpop.f32.mrf.mxu0  ;;  %1573 = vmatmul.mubr.bf16.gmra.mxu1 %v1371_v45  ;;  %v1330_v42 = vsub.f32 %v2648_v63, %v1131_v56  ;;  %v2836_v63 = vld [vmem:[%s2878_s6] ss:$0 sm:$0xff] }
 0x29b   : > { %v1351_v36 = vmul.f32 %v1319_v25, %v1260_v40  ;;  %v1135_v60 = vpop.f32.mrf.mxu1 }
 0x29c   : > { %v1262_v26 = vpop.f32.mrf.mxu0  ;;  %v1331_v46 = vsub.f32 %v2654_v3, %v1135_v60 }
 0x29d   : > { %v1352_v30 = vmul.f32 %v1320_v37, %v1262_v26  ;;  %v1373_v4 = vpack.c.bf16 %v1351_v36, %v1349_v8  ;;  %v1137_v7 = vpop.f32.mrf.mxu1 }
 0x29e   : > { %v1266_v16 = vpop.f32.mrf.mxu0  ;;  %v1332_v38 = vsub.f32 %v2660_v9, %v1137_v7 }
 0x29f   : > { %v1374_v5 = vpack.c.bf16 %v1352_v30, %v1350_v13  ;;  %v1353_v19 = vmul.f32 %v1321_v62, %v1266_v16 }
 0x2a0   : > { %v1268_v12 = vpop.f32.mrf.mxu0 }
 0x2a1   : > { %1580 = vmatprep.mubr.bf16.mxu1 %v1374_v5  ;;  %v1354_v55 = vmul.f32 %v1322_v10, %v1268_v12 }
 0x2a2   : > { %v1272_v61 = vpop.f32.mrf.mxu0  ;;  %1581 = vmatmul.mubr.bf16.gmra.mxu1 %v1373_v4 }
 0x2a3   : > { %v1355_v23 = vmul.f32 %v1323_v1, %v1272_v61 }
 0x2a4   : > { %v1274_v31 = vpop.f32.mrf.mxu0 }
 0x2a5   : > { %v1356_v41 = vmul.f32 %v1324_v57, %v1274_v31  ;;  %v1375_v27 = vpack.c.bf16 %v1355_v23, %v1353_v19 }
 0x2a6   : > { %v1278_v2 = vpop.f32.mrf.mxu0 }
 0x2a7   : > { %v1376_v43 = vpack.c.bf16 %v1356_v41, %v1354_v55  ;;  %v1357_v24 = vmul.f32 %v1325_v15, %v1278_v2 }
 0x2a8   : > { %v1280_v35 = vpop.f32.mrf.mxu0 }
 0x2a9   : > { %1588 = vmatprep.mubr.bf16.mxu1 %v1376_v43  ;;  %v1358_v54 = vmul.f32 %v1326_v33, %v1280_v35 }
 0x2aa   : > { %v1284_v20 = vpop.f32.mrf.mxu0  ;;  %1589 = vmatmul.mubr.bf16.gmra.mxu1 %v1375_v27 }
 0x2ab   : > { %v1359_v29 = vmul.f32 %v1327_v0, %v1284_v20 }
 0x2ac   : > { %v1286_v11 = vpop.f32.mrf.mxu0 }
 0x2ad   : > { %v1360_v44 = vmul.f32 %v1328_v17, %v1286_v11  ;;  %v1377_v51 = vpack.c.bf16 %v1359_v29, %v1357_v24 }
 0x2ae   : > { %v1290_v21 = vpop.f32.mrf.mxu0 }
 0x2af   : > { %v1378_v32 = vpack.c.bf16 %v1360_v44, %v1358_v54  ;;  %v1361_v39 = vmul.f32 %v1329_v50, %v1290_v21 }
 0x2b0   : > { %v1292_v49 = vpop.f32.mrf.mxu0 }
 0x2b1   : > { %1596 = vmatprep.mubr.bf16.mxu1 %v1378_v32  ;;  %v1362_v34 = vmul.f32 %v1330_v42, %v1292_v49 }
 0x2b2   : > { %v1296_v53 = vpop.f32.mrf.mxu0  ;;  %1597 = vmatmul.mubr.bf16.gmra.mxu1 %v1377_v51 }
 0x2b3   : > { %v1363_v6 = vmul.f32 %v1331_v46, %v1296_v53 }
 0x2b4   : > { %v1298_v14 = vpop.f32.mrf.mxu0 }
 0x2b5   : > { %v1364_v22 = vmul.f32 %v1332_v38, %v1298_v14  ;;  %v1379_v28 = vpack.c.bf16 %v1363_v6, %v1361_v39 }
 0x2b7   : > { %v1380_v45 = vpack.c.bf16 %v1364_v22, %v1362_v34 }
 0x2b9   : > { %1604 = vmatprep.mubr.bf16.mxu1 %v1380_v45 }
 0x2ba   : > { %1605 = vmatmul.mubr.bf16.gmra.mxu1 %v1379_v28 }
 0x341   : > { %v2052_v25 = vpop.f32.mrf.mxu0 }
 0x343   : > { %v2053_v3 = vpop.f32.mrf.mxu0 }
 0x344   : > { %v2054_v48 = vadd.f32 %v2053_v3, %v2052_v25 }
 0x345   : > { %v2055_v40 = vpop.f32.mrf.mxu0 }
 0x346   : > { %v1551_v52 = vadd.f32 %v2054_v48, %v2836_v63 }
 0x347   : > { %v2056_v58 = vpop.f32.mrf.mxu0 }
 0x348   : > { %v2057_v9 = vadd.f32 %v2056_v58, %v2055_v40 }
 0x349   : > { %v2058_v37 = vpop.f32.mrf.mxu1 }
 0x34a   : > { %v1554_v18 = vadd.f32 %v2057_v9, %v2836_v63 }
 0x34b   : > { %v2059_v36 = vpop.f32.mrf.mxu1 }
 0x34c   : > { %v1832_v26 = vpack.c.bf16 %v1554_v18, %v1551_v52  ;;  %v2060_v30 = vadd.f32 %v2059_v36, %v2058_v37 }
 0x34d   : > { %v2061_v13 = vpop.f32.mrf.mxu1 }
 0x34e   : > { %1833 = vst [vmem:[%s2845_s23] sm:$0xff] %v1832_v26   ;;  %v1559_v59 = vadd.f32 %v2060_v30, %v2836_v63 }
 0x34f   : > { %v2062_v8 = vpop.f32.mrf.mxu1 }
 0x350   : > { %v2063_v16 = vadd.f32 %v2062_v8, %v2061_v13 }
 0x351   : > { %v2064_v5 = vpop.f32.mrf.mxu1 }
 0x352   : > { %v1562_v4 = vadd.f32 %v2063_v16, %v2836_v63 }
 0x353   : > { %v2065_v12 = vpop.f32.mrf.mxu1 }
 0x354   : > { %v1837_v1 = vpack.c.bf16 %v1562_v4, %v1559_v59  ;;  %v2066_v10 = vadd.f32 %v2065_v12, %v2064_v5 }
 0x355   : > { %v2067_v61 = vpop.f32.mrf.mxu1 }
 0x356   : > { %1869 = vst [vmem:[%s2845_s23 + $0x8] sm:$0xff] %v1837_v1   ;;  %v1567_v23 = vadd.f32 %v2066_v10, %v2836_v63 }
 0x357   : > { %v2068_v57 = vpop.f32.mrf.mxu1 }
 0x358   : > { %v2069_v62 = vadd.f32 %v2068_v57, %v2067_v61 }
 0x35a   : > { %v2070_v47 = vpop.f32.mrf.mxu1  ;;  %v1570_v31 = vadd.f32 %v2069_v62, %v2836_v63 }
 0x35c   : > { %v2071_v55 = vpop.f32.mrf.mxu1  ;;  %v1842_v41 = vpack.c.bf16 %v1570_v31, %v1567_v23 }
 0x35d   : > { %v2072_v2 = vadd.f32 %v2071_v55, %v2070_v47 }
 0x35e   : > { %v2073_v19 = vpop.f32.mrf.mxu1  ;;  %1870 = vst [vmem:[%s2845_s23 + $0x10] sm:$0xff] %v1842_v41  }
 0x35f   : > { %v1575_v35 = vadd.f32 %v2072_v2, %v2836_v63 }
 0x360   : > { %v2074_v43 = vpop.f32.mrf.mxu1 }
 0x361   : > { %v2075_v56 = vadd.f32 %v2074_v43, %v2073_v19 }
 0x362   : > { %v2076_v27 = vpop.f32.mrf.mxu1 }
 0x363   : > { %v1578_v0 = vadd.f32 %v2075_v56, %v2836_v63 }
 0x364   : > { %v2077_v20 = vpop.f32.mrf.mxu1 }
 0x365   : > { %v1847_v33 = vpack.c.bf16 %v1578_v0, %v1575_v35  ;;  %v2078_v15 = vadd.f32 %v2077_v20, %v2076_v27 }
 0x366   : > { %v2079_v17 = vpop.f32.mrf.mxu1 }
 0x367   : > { %1871 = vst [vmem:[%s2845_s23 + $0x18] sm:$0xff] %v1847_v33   ;;  %v1583_v54 = vadd.f32 %v2078_v15, %v2836_v63 }
 0x368   : > { %v2080_v60 = vpop.f32.mrf.mxu1 }
 0x369   : > { %v2081_v29 = vadd.f32 %v2080_v60, %v2079_v17 }
 0x36a   : > { %v2082_v11 = vpop.f32.mrf.mxu1 }
 0x36b   : > { %v1586_v44 = vadd.f32 %v2081_v29, %v2836_v63 }
 0x36c   : > { %v2083_v24 = vpop.f32.mrf.mxu1 }
 0x36d   : > { %v1852_v21 = vpack.c.bf16 %v1586_v44, %v1583_v54  ;;  %v2084_v7 = vadd.f32 %v2083_v24, %v2082_v11 }
 0x36e   : > { %v2085_v32 = vpop.f32.mrf.mxu1 }
 0x36f   : > { %1872 = vst [vmem:[%s2845_s23 + $0x20] sm:$0xff] %v1852_v21   ;;  %v1591_v53 = vadd.f32 %v2084_v7, %v2836_v63 }
 0x370   : > { %v2086_v51 = vpop.f32.mrf.mxu1 }
 0x371   : > { %v2087_v49 = vadd.f32 %v2086_v51, %v2085_v32 }
 0x372   : > { %v2088_v46 = vpop.f32.mrf.mxu1 }
 0x373   : > { %v1594_v42 = vadd.f32 %v2087_v49, %v2836_v63 }
 0x374   : > { %v2089_v38 = vpop.f32.mrf.mxu1 }
 0x375   : > { %v1857_v50 = vpack.c.bf16 %v1594_v42, %v1591_v53  ;;  %v2090_v14 = vadd.f32 %v2089_v38, %v2088_v46 }
 0x376   : > { %v2091_v6 = vpop.f32.mrf.mxu1 }
 0x377   : > { %1873 = vst [vmem:[%s2845_s23 + $0x28] sm:$0xff] %v1857_v50   ;;  %v1599_v45 = vadd.f32 %v2090_v14, %v2836_v63 }
 0x378   : > { %v2092_v34 = vpop.f32.mrf.mxu1 }
 0x379   : > { %v2093_v22 = vadd.f32 %v2092_v34, %v2091_v6 }
 0x37a   : > { %v2094_v39 = vpop.f32.mrf.mxu1 }
 0x37b   : > { %v1602_v28 = vadd.f32 %v2093_v22, %v2836_v63 }
 0x37c   : > { %v2095_v25 = vpop.f32.mrf.mxu1 }
 0x37d   : > { %v1862_v3 = vpack.c.bf16 %v1602_v28, %v1599_v45  ;;  %v2096_v48 = vadd.f32 %v2095_v25, %v2094_v39 }
 0x37e   : > { %v2097_v40 = vpop.f32.mrf.mxu1 }
 0x37f   : > { %1874 = vst [vmem:[%s2845_s23 + $0x30] sm:$0xff] %v1862_v3   ;;  %v1607_v37 = vadd.f32 %v2096_v48, %v2836_v63 }
 0x380   : > { %v2098_v58 = vpop.f32.mrf.mxu1 }
 0x381   : > { %v2099_v9 = vadd.f32 %v2098_v58, %v2097_v40 }
 0x383   : > { %v1610_v52 = vadd.f32 %v2099_v9, %v2836_v63 }
 0x385   : > { %v1867_v18 = vpack.c.bf16 %v1610_v52, %v1607_v37 }
 0x387   : > { %1875 = vst [vmem:[%s2845_s23 + $0x38] sm:$0xff] %v1867_v18  }
 0x388 PF: > { %s17_s24 = sadd.s32 1, %s2194_s24  }
 0x389   : > { %p14_p4 = scmp.ge.s32.totalorder %s17_s24, 10  }
 0x38b   :  { %16 = sbr.rel (!%p14_p4) target bundleno = 1 (0x1), region = 78 }

</bundles_post_ra>
